<compile_context>
chip_gen: v5e
topology: v5e:2x2
jax: 0.10.0
libtpu: 0.0.40
codegen_flags: <defaults>
</compile_context>

<pallas_src>
import functools
import math

import jax
import jax.numpy as jnp
from jax import lax
from jax.experimental import pallas as pl
from jax.experimental.pallas import tpu as pltpu

BN_EPS = 1e-5
# Token-row tile target: kept modest so the fused FFN kernel fits v5e's 16 MiB
# default scoped VMEM (and v7x's 64 MiB total) even for c ~ 512.
_DEFAULT_TM = 256
_PARALLEL_1D = pltpu.CompilerParams(dimension_semantics=("parallel",))


# --------------------------- Pallas kernels ---------------------------------

def _cv1_kernel(x_ref, w_ref, b_ref, a_ref, bout_ref, *, c):
    """cv1 (1x1 conv + BN + SiLU): one wide MXU matmul, result sliced into (a, b)."""
    x = x_ref[...].astype(jnp.bfloat16)
    y = jnp.dot(x, w_ref[...], preferred_element_type=jnp.float32) + b_ref[...]
    y = y * jax.nn.sigmoid(y)
    a_ref[...] = y[:, :c].astype(a_ref.dtype)
    bout_ref[...] = y[:, c:].astype(bout_ref.dtype)


def _attn_block_kernel(x_ref, wqkv_ref, bqkv_ref, pew_ref, peb_ref,
                       wproj_ref, bproj_ref, mleft_ref, mright_ref,
                       o_ref, pad_ref, att_ref, *,
                       num_heads, key_dim, head_dim, H, W):
    """Fused PSABlock attention branch for one batch element:
    qkv conv -> per-head attention -> pe depthwise 3x3 -> proj -> + residual."""
    N = H * W
    c = num_heads * head_dim
    nqk = num_heads * key_dim
    P = W + 1                                   # v rows live at [P, P+N) in pad_ref

    x_res = x_ref[0]                            # (N, c) f32, also the residual
    x = x_res.astype(jnp.bfloat16)

    # qkv 1x1 conv: single wide matmul; columns pre-permuted to [Q | K | V],
    # softmax scale pre-folded into the Q columns/bias.
    qkv = (jnp.dot(x, wqkv_ref[...], preferred_element_type=jnp.float32)
           + bqkv_ref[...])                     # (N, 2*nqk + c)
    v_all = qkv[:, 2 * nqk:]                    # (N, c), per-head channel order

    # --- positional encoding: depthwise 3x3 over v, computed in token space ---
    pad_ref[...] = jnp.zeros_like(pad_ref)
    pad_ref[P:P + N, :] = v_all
    pew = pew_ref[...]                          # (9, c)
    mleft = mleft_ref[...]                      # (N, 1) column-validity masks
    mright = mright_ref[...]
    pe = jnp.zeros((N, c), jnp.float32)
    for di in (-1, 0, 1):
        for dj in (-1, 0, 1):
            start = P + di * W + dj
            tap = pad_ref[start:start + N, :]   # (N, c); row padding => zeros
            if dj == -1:
                tap = tap * mleft
            elif dj == 1:
                tap = tap * mright
            pe = pe + tap * pew[(di + 1) * 3 + (dj + 1), :]
    pe = pe + peb_ref[...]

    # --- per-head attention; each head's result stored into its lane slab ---
    for h in range(num_heads):
        qh = qkv[:, h * key_dim:(h + 1) * key_dim].astype(jnp.bfloat16)
        kh = qkv[:, nqk + h * key_dim:nqk + (h + 1) * key_dim].astype(jnp.bfloat16)
        vh = v_all[:, h * head_dim:(h + 1) * head_dim].astype(jnp.bfloat16)
        s = lax.dot_general(qh, kh, (((1,), (1,)), ((), ())),
                            preferred_element_type=jnp.float32)        # (N, N)
        s = s - jnp.max(s, axis=-1, keepdims=True)
        p = jnp.exp(s)
        p = p * pl.reciprocal(jnp.sum(p, axis=-1, keepdims=True), approx=True)
        att_ref[:, h * head_dim:(h + 1) * head_dim] = jnp.dot(
            p.astype(jnp.bfloat16), vh, preferred_element_type=jnp.float32)
    # TODO(synk): for large N switch the score/softmax to a key-tiled (flash)
    # online softmax; the full NxN per head is fine at YOLO feature-map sizes.

    # --- proj 1x1 conv (+BN) fused with the attention-branch residual ---
    y = (att_ref[...] + pe).astype(jnp.bfloat16)
    out = x_res + (jnp.dot(y, wproj_ref[...], preferred_element_type=jnp.float32)
                   + bproj_ref[...])
    o_ref[0] = out.astype(o_ref.dtype)


def _ffn_residual_kernel(x_ref, w1_ref, b1_ref, w2_ref, b2_ref, o_ref):
    """out = x + ffn2(SiLU(ffn1(x))); the 2c intermediate never leaves VMEM."""
    x = x_ref[...]
    h = jnp.dot(x.astype(jnp.bfloat16), w1_ref[...],
                preferred_element_type=jnp.float32) + b1_ref[...]
    h = h * jax.nn.sigmoid(h)
    y = jnp.dot(h.astype(jnp.bfloat16), w2_ref[...],
                preferred_element_type=jnp.float32) + b2_ref[...]
    o_ref[...] = (x + y).astype(o_ref.dtype)


def _cv2_kernel(a_ref, b_ref, wa_ref, wb_ref, bias_ref, o_ref):
    """cv2 (1x1 conv + BN + SiLU) consuming (a, b) without materializing cat."""
    y = jnp.dot(a_ref[...], wa_ref[...], preferred_element_type=jnp.float32)
    y = y + jnp.dot(b_ref[...].astype(jnp.bfloat16), wb_ref[...],
                    preferred_element_type=jnp.float32)
    y = y + bias_ref[...]
    y = y * jax.nn.sigmoid(y)
    o_ref[...] = y.astype(o_ref.dtype)


# --------------------------- spec helpers ------------------------------------

def _pick_tm(M, target=_DEFAULT_TM):
    """Row tile: multiple of 16, <= target, aiming for >= 4 grid steps so both
    v7x TensorCores stay busy and the pipeline has depth."""
    if M <= 16:
        return M
    tm = min(target, max(16, -(-M // 4)))
    tm = max(16, (tm // 16) * 16)
    return min(tm, M)


def _row_spec(tm, cols):
    return pl.BlockSpec((tm, cols), lambda i: (i, 0))


def _full_spec(rows, cols):
    return pl.BlockSpec((rows, cols), lambda i: (0, 0))


# --------------------------- kernel wrappers ----------------------------------

def cv1_split(x2d, w, bias, c):
    M, cin = x2d.shape
    tm = _pick_tm(M)
    return pl.pallas_call(
        functools.partial(_cv1_kernel, c=c),
        out_shape=(jax.ShapeDtypeStruct((M, c), jnp.bfloat16),
                   jax.ShapeDtypeStruct((M, c), jnp.float32)),
        grid=(pl.cdiv(M, tm),),
        in_specs=[_row_spec(tm, cin), _full_spec(cin, 2 * c), _full_spec(1, 2 * c)],
        out_specs=(_row_spec(tm, c), _row_spec(tm, c)),
        compiler_params=_PARALLEL_1D,
    )(x2d, w, bias)


def attn_block(b3, blk, num_heads, key_dim, head_dim, H, W):
    """Fused qkv + attention + pe + proj + residual, one grid step per batch elem."""
    B, N, c = b3.shape
    tot = blk["qkv_w"].shape[1]
    col = jnp.arange(N, dtype=jnp.int32) % W
    mleft = (col > 0).astype(jnp.float32).reshape(N, 1)
    mright = (col < W - 1).astype(jnp.float32).reshape(N, 1)
    kernel = functools.partial(_attn_block_kernel, num_heads=num_heads,
                               key_dim=key_dim, head_dim=head_dim, H=H, W=W)
    return pl.pallas_call(
        kernel,
        out_shape=jax.ShapeDtypeStruct((B, N, c), jnp.float32),
        grid=(B,),
        in_specs=[pl.BlockSpec((1, N, c), lambda b: (b, 0, 0)),
                  pl.BlockSpec((c, tot), lambda b: (0, 0)),
                  pl.BlockSpec((1, tot), lambda b: (0, 0)),
                  pl.BlockSpec((9, c), lambda b: (0, 0)),
                  pl.BlockSpec((1, c), lambda b: (0, 0)),
                  pl.BlockSpec((c, c), lambda b: (0, 0)),
                  pl.BlockSpec((1, c), lambda b: (0, 0)),
                  pl.BlockSpec((N, 1), lambda b: (0, 0)),
                  pl.BlockSpec((N, 1), lambda b: (0, 0))],
        out_specs=pl.BlockSpec((1, N, c), lambda b: (b, 0, 0)),
        scratch_shapes=[pltpu.VMEM((N + 2 * W + 2, c), jnp.float32),
                        pltpu.VMEM((N, c), jnp.float32)],
        input_output_aliases={0: 0},
        compiler_params=_PARALLEL_1D,
    )(b3, blk["qkv_w"], blk["qkv_b"], blk["pe_w"], blk["pe_b"],
      blk["proj_w"], blk["proj_b"], mleft, mright)


def ffn_residual(x2d, w1, b1, w2, b2):
    M, c = x2d.shape
    c2 = w1.shape[1]
    tm = _pick_tm(M)
    return pl.pallas_call(
        _ffn_residual_kernel,
        out_shape=jax.ShapeDtypeStruct((M, c), jnp.float32),
        grid=(pl.cdiv(M, tm),),
        in_specs=[_row_spec(tm, c),
                  _full_spec(c, c2), _full_spec(1, c2),
                  _full_spec(c2, c), _full_spec(1, c)],
        out_specs=_row_spec(tm, c),
        input_output_aliases={0: 0},
        compiler_params=_PARALLEL_1D,
    )(x2d, w1, b1, w2, b2)


def cv2_fused(a2d, b2d, wa, wb, bias):
    M, c = a2d.shape
    cout = wa.shape[1]
    tm = _pick_tm(M)
    return pl.pallas_call(
        _cv2_kernel,
        out_shape=jax.ShapeDtypeStruct((M, cout), jnp.float32),
        grid=(pl.cdiv(M, tm),),
        in_specs=[_row_spec(tm, c), _row_spec(tm, c),
                  _full_spec(c, cout), _full_spec(c, cout), _full_spec(1, cout)],
        out_specs=_row_spec(tm, cout),
        compiler_params=_PARALLEL_1D,
    )(a2d, b2d, wa, wb, bias)


# --------------------------- parameters & folding ----------------------------

def _conv_params(key, cout, cin, k=1, depthwise=False):
    kw, kb = jax.random.split(key)
    if depthwise:
        w = jax.random.normal(kw, (cout, k, k), jnp.float32) * (1.0 / (k * k))
    else:
        w = jax.random.normal(kw, (cout, cin), jnp.float32) * (1.0 / math.sqrt(cin))
    k1, k2, k3, k4 = jax.random.split(kb, 4)
    gamma = 1.0 + 0.1 * jax.random.normal(k1, (cout,), jnp.float32)
    beta = 0.1 * jax.random.normal(k2, (cout,), jnp.float32)
    mean = 0.1 * jax.random.normal(k3, (cout,), jnp.float32)
    var = jax.nn.softplus(jax.random.normal(k4, (cout,), jnp.float32)) + 0.5
    return dict(w=w, gamma=gamma, beta=beta, mean=mean, var=var)


def init_c2psa(key, c1, n=1, e=0.5):
    c = int(c1 * e)
    num_heads = c // 64
    assert num_heads >= 1, "C2PSA requires hidden channels >= 64 (c1*e >= 64)"
    head_dim = c // num_heads
    key_dim = int(head_dim * 0.5)
    h = c + 2 * num_heads * key_dim
    keys = jax.random.split(key, 2 + n)
    blocks = []
    for i in range(n):
        ks = jax.random.split(keys[2 + i], 5)
        blocks.append(dict(
            qkv=_conv_params(ks[0], h, c),
            proj=_conv_params(ks[1], c, c),
            pe=_conv_params(ks[2], c, c, k=3, depthwise=True),
            ffn1=_conv_params(ks[3], 2 * c, c),
            ffn2=_conv_params(ks[4], c, 2 * c),
        ))
    return dict(c=c, num_heads=num_heads, head_dim=head_dim, key_dim=key_dim,
                cv1=_conv_params(keys[0], 2 * c, c1),
                cv2=_conv_params(keys[1], c1, 2 * c),
                blocks=blocks)


def _fold_bn(p):
    s = p["gamma"] / jnp.sqrt(p["var"] + BN_EPS)
    b = p["beta"] - p["mean"] * s
    return s, b


def _fold_pw(p):
    """(Cin, Cout) bf16 weight with BN scale folded in, plus (1, Cout) f32 bias."""
    s, b = _fold_bn(p)
    w_t = jnp.transpose(p["w"], (1, 0)) * s[None, :]
    return w_t.astype(jnp.bfloat16), b[None, :].astype(jnp.float32)


def _fold_qkv(p, num_heads, key_dim, head_dim):
    """qkv conv: BN folded, columns permuted to [Q(all)|K(all)|V(all)],
    softmax scale folded into the Q columns / bias."""
    s, b = _fold_bn(p)
    w_t = jnp.transpose(p["w"], (1, 0)) * s[None, :]
    per = 2 * key_dim + head_dim
    q_idx = jnp.asarray([h * per + i
                         for h in range(num_heads) for i in range(key_dim)])
    k_idx = jnp.asarray([h * per + key_dim + i
                         for h in range(num_heads) for i in range(key_dim)])
    v_idx = jnp.asarray([h * per + 2 * key_dim + i
                         for h in range(num_heads) for i in range(head_dim)])
    scale = key_dim ** -0.5
    w = jnp.concatenate([w_t[:, q_idx] * scale, w_t[:, k_idx], w_t[:, v_idx]], axis=1)
    bias = jnp.concatenate([b[q_idx] * scale, b[k_idx], b[v_idx]])
    return w.astype(jnp.bfloat16), bias[None, :].astype(jnp.float32)


def _fold_pe(p):
    s, b = _fold_bn(p)
    w = jnp.transpose(p["w"], (1, 2, 0)) * s[None, None, :]      # (3, 3, c)
    return (w.reshape(9, -1).astype(jnp.float32),
            b[None, :].astype(jnp.float32))


def fold_c2psa(params):
    """One-time (eager) weight folding: BN fold, transposes, qkv permutation,
    scale fold, cv2 split. Nothing here runs inside the traced forward."""
    c, nh = params["c"], params["num_heads"]
    kd, hd = params["key_dim"], params["head_dim"]
    cfg = dict(c=c, num_heads=nh, key_dim=kd, head_dim=hd)

    cv1_w, cv1_b = _fold_pw(params["cv1"])
    cv2_w, cv2_b = _fold_pw(params["cv2"])
    blocks = []
    for blk in params["blocks"]:
        qkv_w, qkv_b = _fold_qkv(blk["qkv"], nh, kd, hd)
        pe_w, pe_b = _fold_pe(blk["pe"])
        proj_w, proj_b = _fold_pw(blk["proj"])
        ffn1_w, ffn1_b = _fold_pw(blk["ffn1"])
        ffn2_w, ffn2_b = _fold_pw(blk["ffn2"])
        blocks.append(dict(qkv_w=qkv_w, qkv_b=qkv_b, pe_w=pe_w, pe_b=pe_b,
                           proj_w=proj_w, proj_b=proj_b,
                           ffn1_w=ffn1_w, ffn1_b=ffn1_b,
                           ffn2_w=ffn2_w, ffn2_b=ffn2_b))
    folded = dict(cv1_w=cv1_w, cv1_b=cv1_b,
                  cv2_wa=cv2_w[:c], cv2_wb=cv2_w[c:], cv2_b=cv2_b,
                  blocks=blocks)
    return cfg, folded


# --------------------------- forward ------------------------------------------

def c2psa_forward(x_nchw, folded, *, cfg):
    B, C1, H, W = x_nchw.shape
    N = H * W
    c, nh = cfg["c"], cfg["num_heads"]
    kd, hd = cfg["key_dim"], cfg["head_dim"]

    # NCHW -> tokens (B*N, C), channels-last
    x = jnp.transpose(x_nchw, (0, 2, 3, 1)).reshape(B * N, C1)

    a, b = cv1_split(x, folded["cv1_w"], folded["cv1_b"], c)   # a bf16, b f32

    for blk in folded["blocks"]:
        b = attn_block(b.reshape(B, N, c), blk, nh, kd, hd, H, W).reshape(B * N, c)
        b = ffn_residual(b, blk["ffn1_w"], blk["ffn1_b"],
                         blk["ffn2_w"], blk["ffn2_b"])

    out = cv2_fused(a, b, folded["cv2_wa"], folded["cv2_wb"], folded["cv2_b"])
    return jnp.transpose(out.reshape(B, H, W, C1), (0, 3, 1, 2))


# --------------------------- main ----------------------------------------------

if __name__ == "__main__":
    key = jax.random.PRNGKey(0)
    kx, kp = jax.random.split(key)

    # c1=c2=128, e=0.5 -> hidden c=64, num_heads=1 (smallest valid C2PSA config)
    B, C1, H, W = 2, 128, 8, 8
    x = jax.random.normal(kx, (B, C1, H, W), jnp.float32)
    params = init_c2psa(kp, C1, n=1, e=0.5)

    cfg, folded = fold_c2psa(params)        # weight folding hoisted out of forward
    fwd = jax.jit(functools.partial(c2psa_forward, cfg=cfg))
    out = fwd(x, folded)
    jax.block_until_ready(out)
    assert out.shape == (B, C1, H, W)
    assert bool(jnp.all(jnp.isfinite(out)))
    print("KERNEL_OK")
</pallas_src>

<mosaic_0001>
module attributes {stable_mosaic.version = 11 : i64} {
  func.func @_attn_block_kernel(%arg0: i32, %arg1: memref<1x64x64xf32, #tpu.memory_space<vmem>>, %arg2: memref<64x128xbf16, #tpu.memory_space<vmem>>, %arg3: memref<1x128xf32, #tpu.memory_space<vmem>>, %arg4: memref<9x64xf32, #tpu.memory_space<vmem>>, %arg5: memref<1x64xf32, #tpu.memory_space<vmem>>, %arg6: memref<64x64xbf16, #tpu.memory_space<vmem>>, %arg7: memref<1x64xf32, #tpu.memory_space<vmem>>, %arg8: memref<64x1xf32, #tpu.memory_space<vmem>>, %arg9: memref<64x1xf32, #tpu.memory_space<vmem>>, %arg10: memref<1x64x64xf32, #tpu.memory_space<vmem>>, %arg11: memref<82x64xf32, #tpu.memory_space<vmem>>, %arg12: memref<64x64xf32, #tpu.memory_space<vmem>>) attributes {dimension_semantics = [#tpu.dimension_semantics<parallel>], iteration_bounds = array<i64: 2>, scalar_prefetch = 0 : i64, scratch_operands = 2 : i64, tpu.core_type = #tpu.core_type<tc>, window_params = [{transform_indices = @transform_0, window_bounds = array<i64: 1, 64, 64>}, {pipeline_mode = #tpu.pipeline_mode<synchronous>, transform_indices = @transform_1, window_bounds = array<i64: 64, 128>}, {pipeline_mode = #tpu.pipeline_mode<synchronous>, transform_indices = @transform_2, window_bounds = array<i64: 1, 128>}, {pipeline_mode = #tpu.pipeline_mode<synchronous>, transform_indices = @transform_3, window_bounds = array<i64: 9, 64>}, {pipeline_mode = #tpu.pipeline_mode<synchronous>, transform_indices = @transform_4, window_bounds = array<i64: 1, 64>}, {pipeline_mode = #tpu.pipeline_mode<synchronous>, transform_indices = @transform_5, window_bounds = array<i64: 64, 64>}, {pipeline_mode = #tpu.pipeline_mode<synchronous>, transform_indices = @transform_6, window_bounds = array<i64: 1, 64>}, {pipeline_mode = #tpu.pipeline_mode<synchronous>, transform_indices = @transform_7, window_bounds = array<i64: 64, 1>}, {pipeline_mode = #tpu.pipeline_mode<synchronous>, transform_indices = @transform_8, window_bounds = array<i64: 64, 1>}, {transform_indices = @transform_9, window_bounds = array<i64: 1, 64, 64>}]} {
    %c0 = arith.constant 0 : index
    %c0_0 = arith.constant 0 : index
    %c0_1 = arith.constant 0 : index
    %0 = vector.load %arg1[%c0, %c0_0, %c0_1] : memref<1x64x64xf32, #tpu.memory_space<vmem>>, vector<1x64x64xf32>
    %1 = vector.shape_cast %0 : vector<1x64x64xf32> to vector<64x64xf32>
    %2 = arith.truncf %1 : vector<64x64xf32> to vector<64x64xbf16>
    %c0_2 = arith.constant 0 : index
    %c0_3 = arith.constant 0 : index
    %3 = vector.load %arg2[%c0_2, %c0_3] : memref<64x128xbf16, #tpu.memory_space<vmem>>, vector<64x128xbf16>
    %cst = arith.constant dense<0.000000e+00> : vector<64x128xf32>
    %4 = tpu.matmul %2, %3, %cst {dimension_numbers = #tpu.dot_dimension_numbers<[1], [0], [0], [1], [0, 0, 1, 1], [], []>} : vector<64x64xbf16>, vector<64x128xbf16>, vector<64x128xf32> -> vector<64x128xf32>
    %c0_4 = arith.constant 0 : index
    %c0_5 = arith.constant 0 : index
    %5 = vector.load %arg3[%c0_4, %c0_5] : memref<1x128xf32, #tpu.memory_space<vmem>>, vector<1x128xf32>
    %6 = vector.broadcast %5 : vector<1x128xf32> to vector<64x128xf32>
    %7 = arith.addf %4, %6 : vector<64x128xf32>
    %8 = vector.extract_strided_slice %7 {offsets = [0, 64], sizes = [64, 64], strides = [1, 1]} : vector<64x128xf32> to vector<64x64xf32>
    %cst_6 = arith.constant 0.000000e+00 : f32
    %9 = vector.broadcast %cst_6 : f32 to vector<82x64xf32>
    %c0_7 = arith.constant 0 : index
    %c0_8 = arith.constant 0 : index
    %10 = vector.load %arg11[%c0_7, %c0_8] : memref<82x64xf32, #tpu.memory_space<vmem>>, vector<82x64xf32>
    tpu.vector_store %arg11[%c0_7, %c0_8], %9 {strides = array<i32>} : memref<82x64xf32, #tpu.memory_space<vmem>>, vector<82x64xf32>,
    %c9 = arith.constant 9 : index
    %c0_9 = arith.constant 0 : index
    %11 = vector.load %arg11[%c9, %c0_9] : memref<82x64xf32, #tpu.memory_space<vmem>>, vector<64x64xf32>
    tpu.vector_store %arg11[%c9, %c0_9], %8 {strides = array<i32>} : memref<82x64xf32, #tpu.memory_space<vmem>>, vector<64x64xf32>,
    %c0_10 = arith.constant 0 : index
    %c0_11 = arith.constant 0 : index
    %12 = vector.load %arg4[%c0_10, %c0_11] : memref<9x64xf32, #tpu.memory_space<vmem>>, vector<9x64xf32>
    %c0_12 = arith.constant 0 : index
    %c0_13 = arith.constant 0 : index
    %13 = vector.load %arg8[%c0_12, %c0_13] : memref<64x1xf32, #tpu.memory_space<vmem>>, vector<64x1xf32>
    %c0_14 = arith.constant 0 : index
    %c0_15 = arith.constant 0 : index
    %14 = vector.load %arg9[%c0_14, %c0_15] : memref<64x1xf32, #tpu.memory_space<vmem>>, vector<64x1xf32>
    %cst_16 = arith.constant 0.000000e+00 : f32
    %15 = vector.broadcast %cst_16 : f32 to vector<64x64xf32>
    %c0_17 = arith.constant 0 : index
    %c0_18 = arith.constant 0 : index
    %16 = vector.load %arg11[%c0_17, %c0_18] : memref<82x64xf32, #tpu.memory_space<vmem>>, vector<64x64xf32>
    %17 = vector.broadcast %13 : vector<64x1xf32> to vector<64x64xf32>
    %18 = arith.mulf %16, %17 : vector<64x64xf32>
    %19 = vector.extract_strided_slice %12 {offsets = [0, 0], sizes = [1, 64], strides = [1, 1]} : vector<9x64xf32> to vector<1x64xf32>
    %20 = vector.shape_cast %19 : vector<1x64xf32> to vector<64xf32>
    %21 = vector.shape_cast %20 : vector<64xf32> to vector<1x64xf32>
    %22 = vector.broadcast %21 : vector<1x64xf32> to vector<64x64xf32>
    %23 = arith.mulf %18, %22 : vector<64x64xf32>
    %24 = arith.addf %15, %23 : vector<64x64xf32>
    %c1 = arith.constant 1 : index
    %c0_19 = arith.constant 0 : index
    %25 = vector.load %arg11[%c1, %c0_19] : memref<82x64xf32, #tpu.memory_space<vmem>>, vector<64x64xf32>
    %26 = vector.extract_strided_slice %12 {offsets = [1, 0], sizes = [1, 64], strides = [1, 1]} : vector<9x64xf32> to vector<1x64xf32>
    %27 = vector.shape_cast %26 : vector<1x64xf32> to vector<64xf32>
    %28 = vector.shape_cast %27 : vector<64xf32> to vector<1x64xf32>
    %29 = vector.broadcast %28 : vector<1x64xf32> to vector<64x64xf32>
    %30 = arith.mulf %25, %29 : vector<64x64xf32>
    %31 = arith.addf %24, %30 : vector<64x64xf32>
    %c2 = arith.constant 2 : index
    %c0_20 = arith.constant 0 : index
    %32 = vector.load %arg11[%c2, %c0_20] : memref<82x64xf32, #tpu.memory_space<vmem>>, vector<64x64xf32>
    %33 = vector.broadcast %14 : vector<64x1xf32> to vector<64x64xf32>
    %34 = arith.mulf %32, %33 : vector<64x64xf32>
    %35 = vector.extract_strided_slice %12 {offsets = [2, 0], sizes = [1, 64], strides = [1, 1]} : vector<9x64xf32> to vector<1x64xf32>
    %36 = vector.shape_cast %35 : vector<1x64xf32> to vector<64xf32>
    %37 = vector.shape_cast %36 : vector<64xf32> to vector<1x64xf32>
    %38 = vector.broadcast %37 : vector<1x64xf32> to vector<64x64xf32>
    %39 = arith.mulf %34, %38 : vector<64x64xf32>
    %40 = arith.addf %31, %39 : vector<64x64xf32>
    %c8 = arith.constant 8 : index
    %c0_21 = arith.constant 0 : index
    %41 = vector.load %arg11[%c8, %c0_21] : memref<82x64xf32, #tpu.memory_space<vmem>>, vector<64x64xf32>
    %42 = vector.broadcast %13 : vector<64x1xf32> to vector<64x64xf32>
    %43 = arith.mulf %41, %42 : vector<64x64xf32>
    %44 = vector.extract_strided_slice %12 {offsets = [3, 0], sizes = [1, 64], strides = [1, 1]} : vector<9x64xf32> to vector<1x64xf32>
    %45 = vector.shape_cast %44 : vector<1x64xf32> to vector<64xf32>
    %46 = vector.shape_cast %45 : vector<64xf32> to vector<1x64xf32>
    %47 = vector.broadcast %46 : vector<1x64xf32> to vector<64x64xf32>
    %48 = arith.mulf %43, %47 : vector<64x64xf32>
    %49 = arith.addf %40, %48 : vector<64x64xf32>
    %c9_22 = arith.constant 9 : index
    %c0_23 = arith.constant 0 : index
    %50 = vector.load %arg11[%c9_22, %c0_23] : memref<82x64xf32, #tpu.memory_space<vmem>>, vector<64x64xf32>
    %51 = vector.extract_strided_slice %12 {offsets = [4, 0], sizes = [1, 64], strides = [1, 1]} : vector<9x64xf32> to vector<1x64xf32>
    %52 = vector.shape_cast %51 : vector<1x64xf32> to vector<64xf32>
    %53 = vector.shape_cast %52 : vector<64xf32> to vector<1x64xf32>
    %54 = vector.broadcast %53 : vector<1x64xf32> to vector<64x64xf32>
    %55 = arith.mulf %50, %54 : vector<64x64xf32>
    %56 = arith.addf %49, %55 : vector<64x64xf32>
    %c10 = arith.constant 10 : index
    %c0_24 = arith.constant 0 : index
    %57 = vector.load %arg11[%c10, %c0_24] : memref<82x64xf32, #tpu.memory_space<vmem>>, vector<64x64xf32>
    %58 = vector.broadcast %14 : vector<64x1xf32> to vector<64x64xf32>
    %59 = arith.mulf %57, %58 : vector<64x64xf32>
    %60 = vector.extract_strided_slice %12 {offsets = [5, 0], sizes = [1, 64], strides = [1, 1]} : vector<9x64xf32> to vector<1x64xf32>
    %61 = vector.shape_cast %60 : vector<1x64xf32> to vector<64xf32>
    %62 = vector.shape_cast %61 : vector<64xf32> to vector<1x64xf32>
    %63 = vector.broadcast %62 : vector<1x64xf32> to vector<64x64xf32>
    %64 = arith.mulf %59, %63 : vector<64x64xf32>
    %65 = arith.addf %56, %64 : vector<64x64xf32>
    %c16 = arith.constant 16 : index
    %c0_25 = arith.constant 0 : index
    %66 = vector.load %arg11[%c16, %c0_25] : memref<82x64xf32, #tpu.memory_space<vmem>>, vector<64x64xf32>
    %67 = vector.broadcast %13 : vector<64x1xf32> to vector<64x64xf32>
    %68 = arith.mulf %66, %67 : vector<64x64xf32>
    %69 = vector.extract_strided_slice %12 {offsets = [6, 0], sizes = [1, 64], strides = [1, 1]} : vector<9x64xf32> to vector<1x64xf32>
    %70 = vector.shape_cast %69 : vector<1x64xf32> to vector<64xf32>
    %71 = vector.shape_cast %70 : vector<64xf32> to vector<1x64xf32>
    %72 = vector.broadcast %71 : vector<1x64xf32> to vector<64x64xf32>
    %73 = arith.mulf %68, %72 : vector<64x64xf32>
    %74 = arith.addf %65, %73 : vector<64x64xf32>
    %c17 = arith.constant 17 : index
    %c0_26 = arith.constant 0 : index
    %75 = vector.load %arg11[%c17, %c0_26] : memref<82x64xf32, #tpu.memory_space<vmem>>, vector<64x64xf32>
    %76 = vector.extract_strided_slice %12 {offsets = [7, 0], sizes = [1, 64], strides = [1, 1]} : vector<9x64xf32> to vector<1x64xf32>
    %77 = vector.shape_cast %76 : vector<1x64xf32> to vector<64xf32>
    %78 = vector.shape_cast %77 : vector<64xf32> to vector<1x64xf32>
    %79 = vector.broadcast %78 : vector<1x64xf32> to vector<64x64xf32>
    %80 = arith.mulf %75, %79 : vector<64x64xf32>
    %81 = arith.addf %74, %80 : vector<64x64xf32>
    %c18 = arith.constant 18 : index
    %c0_27 = arith.constant 0 : index
    %82 = vector.load %arg11[%c18, %c0_27] : memref<82x64xf32, #tpu.memory_space<vmem>>, vector<64x64xf32>
    %83 = vector.broadcast %14 : vector<64x1xf32> to vector<64x64xf32>
    %84 = arith.mulf %82, %83 : vector<64x64xf32>
    %85 = vector.extract_strided_slice %12 {offsets = [8, 0], sizes = [1, 64], strides = [1, 1]} : vector<9x64xf32> to vector<1x64xf32>
    %86 = vector.shape_cast %85 : vector<1x64xf32> to vector<64xf32>
    %87 = vector.shape_cast %86 : vector<64xf32> to vector<1x64xf32>
    %88 = vector.broadcast %87 : vector<1x64xf32> to vector<64x64xf32>
    %89 = arith.mulf %84, %88 : vector<64x64xf32>
    %90 = arith.addf %81, %89 : vector<64x64xf32>
    %c0_28 = arith.constant 0 : index
    %c0_29 = arith.constant 0 : index
    %91 = vector.load %arg5[%c0_28, %c0_29] : memref<1x64xf32, #tpu.memory_space<vmem>>, vector<1x64xf32>
    %92 = vector.broadcast %91 : vector<1x64xf32> to vector<64x64xf32>
    %93 = arith.addf %90, %92 : vector<64x64xf32>
    %94 = vector.extract_strided_slice %7 {offsets = [0, 0], sizes = [64, 32], strides = [1, 1]} : vector<64x128xf32> to vector<64x32xf32>
    %95 = arith.truncf %94 : vector<64x32xf32> to vector<64x32xbf16>
    %96 = vector.extract_strided_slice %7 {offsets = [0, 32], sizes = [64, 32], strides = [1, 1]} : vector<64x128xf32> to vector<64x32xf32>
    %97 = arith.truncf %96 : vector<64x32xf32> to vector<64x32xbf16>
    %98 = arith.truncf %8 : vector<64x64xf32> to vector<64x64xbf16>
    %cst_30 = arith.constant dense<0.000000e+00> : vector<64x64xf32>
    %99 = tpu.matmul %95, %97, %cst_30 {dimension_numbers = #tpu.dot_dimension_numbers<[1], [1], [0], [0], [0, 0, 1, 0], [], []>} : vector<64x32xbf16>, vector<64x32xbf16>, vector<64x64xf32> -> vector<64x64xf32>
    %cst_31 = arith.constant dense<0xFF800000> : vector<64xf32>
    %100 = vector.multi_reduction <maximumf>, %99, %cst_31 [1] : vector<64x64xf32> to vector<64xf32>
    %101 = vector.shape_cast %100 : vector<64xf32> to vector<64x1xf32>
    %102 = vector.broadcast %101 : vector<64x1xf32> to vector<64x64xf32>
    %103 = arith.subf %99, %102 : vector<64x64xf32>
    %104 = math.exp %103 : vector<64x64xf32>
    %cst_32 = arith.constant dense<0.000000e+00> : vector<64xf32>
    %105 = vector.multi_reduction <add>, %104, %cst_32 [1] : vector<64x64xf32> to vector<64xf32>
    %106 = vector.shape_cast %105 : vector<64xf32> to vector<64x1xf32>
    %107 = tpu.reciprocal %106 {approx = true} : vector<64x1xf32> -> vector<64x1xf32>
    %108 = vector.broadcast %107 : vector<64x1xf32> to vector<64x64xf32>
    %109 = arith.mulf %104, %108 : vector<64x64xf32>
    %110 = arith.truncf %109 : vector<64x64xf32> to vector<64x64xbf16>
    %cst_33 = arith.constant dense<0.000000e+00> : vector<64x64xf32>
    %111 = tpu.matmul %110, %98, %cst_33 {dimension_numbers = #tpu.dot_dimension_numbers<[1], [0], [0], [1], [0, 0, 1, 1], [], []>} : vector<64x64xbf16>, vector<64x64xbf16>, vector<64x64xf32> -> vector<64x64xf32>
    %c0_34 = arith.constant 0 : index
    %c0_35 = arith.constant 0 : index
    %112 = vector.load %arg12[%c0_34, %c0_35] : memref<64x64xf32, #tpu.memory_space<vmem>>, vector<64x64xf32>
    tpu.vector_store %arg12[%c0_34, %c0_35], %111 {strides = array<i32>} : memref<64x64xf32, #tpu.memory_space<vmem>>, vector<64x64xf32>,
    %c0_36 = arith.constant 0 : index
    %c0_37 = arith.constant 0 : index
    %113 = vector.load %arg12[%c0_36, %c0_37] : memref<64x64xf32, #tpu.memory_space<vmem>>, vector<64x64xf32>
    %114 = arith.addf %113, %93 : vector<64x64xf32>
    %115 = arith.truncf %114 : vector<64x64xf32> to vector<64x64xbf16>
    %c0_38 = arith.constant 0 : index
    %c0_39 = arith.constant 0 : index
    %116 = vector.load %arg6[%c0_38, %c0_39] : memref<64x64xbf16, #tpu.memory_space<vmem>>, vector<64x64xbf16>
    %cst_40 = arith.constant dense<0.000000e+00> : vector<64x64xf32>
    %117 = tpu.matmul %115, %116, %cst_40 {dimension_numbers = #tpu.dot_dimension_numbers<[1], [0], [0], [1], [0, 0, 1, 1], [], []>} : vector<64x64xbf16>, vector<64x64xbf16>, vector<64x64xf32> -> vector<64x64xf32>
    %c0_41 = arith.constant 0 : index
    %c0_42 = arith.constant 0 : index
    %118 = vector.load %arg7[%c0_41, %c0_42] : memref<1x64xf32, #tpu.memory_space<vmem>>, vector<1x64xf32>
    %119 = vector.broadcast %118 : vector<1x64xf32> to vector<64x64xf32>
    %120 = arith.addf %117, %119 : vector<64x64xf32>
    %121 = arith.addf %1, %120 : vector<64x64xf32>
    %c0_43 = arith.constant 0 : index
    %c0_44 = arith.constant 0 : index
    %c0_45 = arith.constant 0 : index
    %122 = vector.load %arg10[%c0_43, %c0_44, %c0_45] : memref<1x64x64xf32, #tpu.memory_space<vmem>>, vector<1x64x64xf32>
    %123 = vector.shape_cast %122 : vector<1x64x64xf32> to vector<64x64xf32>
    %124 = vector.shape_cast %121 : vector<64x64xf32> to vector<1x64x64xf32>
    tpu.vector_store %arg10[%c0_43, %c0_44, %c0_45], %124 {strides = array<i32>} : memref<1x64x64xf32, #tpu.memory_space<vmem>>, vector<1x64x64xf32>,
    return
  }
  func.func @transform_0(%arg0: i32) -> (i32, i32, i32) {
    %c0_i32 = arith.constant 0 : i32
    %c0_i32_0 = arith.constant 0 : i32
    %c0_i32_1 = arith.constant 0 : i32
    return %arg0, %c0_i32, %c0_i32_0 : i32, i32, i32
  }
  func.func @transform_1(%arg0: i32) -> (i32, i32) {
    %c0_i32 = arith.constant 0 : i32
    %c0_i32_0 = arith.constant 0 : i32
    %c0_i32_1 = arith.constant 0 : i32
    return %c0_i32, %c0_i32_0 : i32, i32
  }
  func.func @transform_2(%arg0: i32) -> (i32, i32) {
    %c0_i32 = arith.constant 0 : i32
    %c0_i32_0 = arith.constant 0 : i32
    %c0_i32_1 = arith.constant 0 : i32
    return %c0_i32, %c0_i32_0 : i32, i32
  }
  func.func @transform_3(%arg0: i32) -> (i32, i32) {
    %c0_i32 = arith.constant 0 : i32
    %c0_i32_0 = arith.constant 0 : i32
    %c0_i32_1 = arith.constant 0 : i32
    return %c0_i32, %c0_i32_0 : i32, i32
  }
  func.func @transform_4(%arg0: i32) -> (i32, i32) {
    %c0_i32 = arith.constant 0 : i32
    %c0_i32_0 = arith.constant 0 : i32
    %c0_i32_1 = arith.constant 0 : i32
    return %c0_i32, %c0_i32_0 : i32, i32
  }
  func.func @transform_5(%arg0: i32) -> (i32, i32) {
    %c0_i32 = arith.constant 0 : i32
    %c0_i32_0 = arith.constant 0 : i32
    %c0_i32_1 = arith.constant 0 : i32
    return %c0_i32, %c0_i32_0 : i32, i32
  }
  func.func @transform_6(%arg0: i32) -> (i32, i32) {
    %c0_i32 = arith.constant 0 : i32
    %c0_i32_0 = arith.constant 0 : i32
    %c0_i32_1 = arith.constant 0 : i32
    return %c0_i32, %c0_i32_0 : i32, i32
  }
  func.func @transform_7(%arg0: i32) -> (i32, i32) {
    %c0_i32 = arith.constant 0 : i32
    %c0_i32_0 = arith.constant 0 : i32
    %c0_i32_1 = arith.constant 0 : i32
    return %c0_i32, %c0_i32_0 : i32, i32
  }
  func.func @transform_8(%arg0: i32) -> (i32, i32) {
    %c0_i32 = arith.constant 0 : i32
    %c0_i32_0 = arith.constant 0 : i32
    %c0_i32_1 = arith.constant 0 : i32
    return %c0_i32, %c0_i32_0 : i32, i32
  }
  func.func @transform_9(%arg0: i32) -> (i32, i32, i32) {
    %c0_i32 = arith.constant 0 : i32
    %c0_i32_0 = arith.constant 0 : i32
    %c0_i32_1 = arith.constant 0 : i32
    return %arg0, %c0_i32, %c0_i32_0 : i32, i32, i32
  }
}

module attributes {stable_mosaic.version = 11 : i64} {
  func.func @_cv1_kernel(%arg0: i32, %arg1: memref<32x128xf32, #tpu.memory_space<vmem>>, %arg2: memref<128x128xbf16, #tpu.memory_space<vmem>>, %arg3: memref<1x128xf32, #tpu.memory_space<vmem>>, %arg4: memref<32x64xbf16, #tpu.memory_space<vmem>>, %arg5: memref<32x64xf32, #tpu.memory_space<vmem>>) attributes {dimension_semantics = [#tpu.dimension_semantics<parallel>], iteration_bounds = array<i64: 4>, scalar_prefetch = 0 : i64, scratch_operands = 0 : i64, tpu.core_type = #tpu.core_type<tc>, window_params = [{transform_indices = @transform_0, window_bounds = array<i64: 32, 128>}, {pipeline_mode = #tpu.pipeline_mode<synchronous>, transform_indices = @transform_1, window_bounds = array<i64: 128, 128>}, {pipeline_mode = #tpu.pipeline_mode<synchronous>, transform_indices = @transform_2, window_bounds = array<i64: 1, 128>}, {transform_indices = @transform_3, window_bounds = array<i64: 32, 64>}, {transform_indices = @transform_4, window_bounds = array<i64: 32, 64>}]} {
    %c0 = arith.constant 0 : index
    %c0_0 = arith.constant 0 : index
    %0 = vector.load %arg1[%c0, %c0_0] : memref<32x128xf32, #tpu.memory_space<vmem>>, vector<32x128xf32>
    %1 = arith.truncf %0 : vector<32x128xf32> to vector<32x128xbf16>
    %c0_1 = arith.constant 0 : index
    %c0_2 = arith.constant 0 : index
    %2 = vector.load %arg2[%c0_1, %c0_2] : memref<128x128xbf16, #tpu.memory_space<vmem>>, vector<128x128xbf16>
    %cst = arith.constant dense<0.000000e+00> : vector<32x128xf32>
    %3 = tpu.matmul %1, %2, %cst {dimension_numbers = #tpu.dot_dimension_numbers<[1], [0], [0], [1], [0, 0, 1, 1], [], []>} : vector<32x128xbf16>, vector<128x128xbf16>, vector<32x128xf32> -> vector<32x128xf32>
    %c0_3 = arith.constant 0 : index
    %c0_4 = arith.constant 0 : index
    %4 = vector.load %arg3[%c0_3, %c0_4] : memref<1x128xf32, #tpu.memory_space<vmem>>, vector<1x128xf32>
    %5 = vector.broadcast %4 : vector<1x128xf32> to vector<32x128xf32>
    %6 = arith.addf %3, %5 : vector<32x128xf32>
    %7 = arith.negf %6 : vector<32x128xf32>
    %8 = math.exp %7 : vector<32x128xf32>
    %cst_5 = arith.constant 1.000000e+00 : f32
    %9 = vector.broadcast %cst_5 : f32 to vector<32x128xf32>
    %10 = arith.addf %9, %8 : vector<32x128xf32>
    %11 = arith.divf %9, %10 : vector<32x128xf32>
    %12 = arith.mulf %6, %11 : vector<32x128xf32>
    %13 = vector.extract_strided_slice %12 {offsets = [0, 0], sizes = [32, 64], strides = [1, 1]} : vector<32x128xf32> to vector<32x64xf32>
    %14 = arith.truncf %13 : vector<32x64xf32> to vector<32x64xbf16>
    %c0_6 = arith.constant 0 : index
    %c0_7 = arith.constant 0 : index
    %15 = vector.load %arg4[%c0_6, %c0_7] : memref<32x64xbf16, #tpu.memory_space<vmem>>, vector<32x64xbf16>
    tpu.vector_store %arg4[%c0_6, %c0_7], %14 {strides = array<i32>} : memref<32x64xbf16, #tpu.memory_space<vmem>>, vector<32x64xbf16>,
    %16 = vector.extract_strided_slice %12 {offsets = [0, 64], sizes = [32, 64], strides = [1, 1]} : vector<32x128xf32> to vector<32x64xf32>
    %c0_8 = arith.constant 0 : index
    %c0_9 = arith.constant 0 : index
    %17 = vector.load %arg5[%c0_8, %c0_9] : memref<32x64xf32, #tpu.memory_space<vmem>>, vector<32x64xf32>
    tpu.vector_store %arg5[%c0_8, %c0_9], %16 {strides = array<i32>} : memref<32x64xf32, #tpu.memory_space<vmem>>, vector<32x64xf32>,
    return
  }
  func.func @transform_0(%arg0: i32) -> (i32, i32) {
    %c0_i32 = arith.constant 0 : i32
    %c0_i32_0 = arith.constant 0 : i32
    return %arg0, %c0_i32 : i32, i32
  }
  func.func @transform_1(%arg0: i32) -> (i32, i32) {
    %c0_i32 = arith.constant 0 : i32
    %c0_i32_0 = arith.constant 0 : i32
    %c0_i32_1 = arith.constant 0 : i32
    return %c0_i32, %c0_i32_0 : i32, i32
  }
  func.func @transform_2(%arg0: i32) -> (i32, i32) {
    %c0_i32 = arith.constant 0 : i32
    %c0_i32_0 = arith.constant 0 : i32
    %c0_i32_1 = arith.constant 0 : i32
    return %c0_i32, %c0_i32_0 : i32, i32
  }
  func.func @transform_3(%arg0: i32) -> (i32, i32) {
    %c0_i32 = arith.constant 0 : i32
    %c0_i32_0 = arith.constant 0 : i32
    return %arg0, %c0_i32 : i32, i32
  }
  func.func @transform_4(%arg0: i32) -> (i32, i32) {
    %c0_i32 = arith.constant 0 : i32
    %c0_i32_0 = arith.constant 0 : i32
    return %arg0, %c0_i32 : i32, i32
  }
}

module attributes {stable_mosaic.version = 11 : i64} {
  func.func @_ffn_residual_kernel(%arg0: i32, %arg1: memref<32x64xf32, #tpu.memory_space<vmem>>, %arg2: memref<64x128xbf16, #tpu.memory_space<vmem>>, %arg3: memref<1x128xf32, #tpu.memory_space<vmem>>, %arg4: memref<128x64xbf16, #tpu.memory_space<vmem>>, %arg5: memref<1x64xf32, #tpu.memory_space<vmem>>, %arg6: memref<32x64xf32, #tpu.memory_space<vmem>>) attributes {dimension_semantics = [#tpu.dimension_semantics<parallel>], iteration_bounds = array<i64: 4>, scalar_prefetch = 0 : i64, scratch_operands = 0 : i64, tpu.core_type = #tpu.core_type<tc>, window_params = [{transform_indices = @transform_0, window_bounds = array<i64: 32, 64>}, {pipeline_mode = #tpu.pipeline_mode<synchronous>, transform_indices = @transform_1, window_bounds = array<i64: 64, 128>}, {pipeline_mode = #tpu.pipeline_mode<synchronous>, transform_indices = @transform_2, window_bounds = array<i64: 1, 128>}, {pipeline_mode = #tpu.pipeline_mode<synchronous>, transform_indices = @transform_3, window_bounds = array<i64: 128, 64>}, {pipeline_mode = #tpu.pipeline_mode<synchronous>, transform_indices = @transform_4, window_bounds = array<i64: 1, 64>}, {transform_indices = @transform_5, window_bounds = array<i64: 32, 64>}]} {
    %c0 = arith.constant 0 : index
    %c0_0 = arith.constant 0 : index
    %0 = vector.load %arg1[%c0, %c0_0] : memref<32x64xf32, #tpu.memory_space<vmem>>, vector<32x64xf32>
    %1 = arith.truncf %0 : vector<32x64xf32> to vector<32x64xbf16>
    %c0_1 = arith.constant 0 : index
    %c0_2 = arith.constant 0 : index
    %2 = vector.load %arg2[%c0_1, %c0_2] : memref<64x128xbf16, #tpu.memory_space<vmem>>, vector<64x128xbf16>
    %cst = arith.constant dense<0.000000e+00> : vector<32x128xf32>
    %3 = tpu.matmul %1, %2, %cst {dimension_numbers = #tpu.dot_dimension_numbers<[1], [0], [0], [1], [0, 0, 1, 1], [], []>} : vector<32x64xbf16>, vector<64x128xbf16>, vector<32x128xf32> -> vector<32x128xf32>
    %c0_3 = arith.constant 0 : index
    %c0_4 = arith.constant 0 : index
    %4 = vector.load %arg3[%c0_3, %c0_4] : memref<1x128xf32, #tpu.memory_space<vmem>>, vector<1x128xf32>
    %5 = vector.broadcast %4 : vector<1x128xf32> to vector<32x128xf32>
    %6 = arith.addf %3, %5 : vector<32x128xf32>
    %7 = arith.negf %6 : vector<32x128xf32>
    %8 = math.exp %7 : vector<32x128xf32>
    %cst_5 = arith.constant 1.000000e+00 : f32
    %9 = vector.broadcast %cst_5 : f32 to vector<32x128xf32>
    %10 = arith.addf %9, %8 : vector<32x128xf32>
    %11 = arith.divf %9, %10 : vector<32x128xf32>
    %12 = arith.mulf %6, %11 : vector<32x128xf32>
    %13 = arith.truncf %12 : vector<32x128xf32> to vector<32x128xbf16>
    %c0_6 = arith.constant 0 : index
    %c0_7 = arith.constant 0 : index
    %14 = vector.load %arg4[%c0_6, %c0_7] : memref<128x64xbf16, #tpu.memory_space<vmem>>, vector<128x64xbf16>
    %cst_8 = arith.constant dense<0.000000e+00> : vector<32x64xf32>
    %15 = tpu.matmul %13, %14, %cst_8 {dimension_numbers = #tpu.dot_dimension_numbers<[1], [0], [0], [1], [0, 0, 1, 1], [], []>} : vector<32x128xbf16>, vector<128x64xbf16>, vector<32x64xf32> -> vector<32x64xf32>
    %c0_9 = arith.constant 0 : index
    %c0_10 = arith.constant 0 : index
    %16 = vector.load %arg5[%c0_9, %c0_10] : memref<1x64xf32, #tpu.memory_space<vmem>>, vector<1x64xf32>
    %17 = vector.broadcast %16 : vector<1x64xf32> to vector<32x64xf32>
    %18 = arith.addf %15, %17 : vector<32x64xf32>
    %19 = arith.addf %0, %18 : vector<32x64xf32>
    %c0_11 = arith.constant 0 : index
    %c0_12 = arith.constant 0 : index
    %20 = vector.load %arg6[%c0_11, %c0_12] : memref<32x64xf32, #tpu.memory_space<vmem>>, vector<32x64xf32>
    tpu.vector_store %arg6[%c0_11, %c0_12], %19 {strides = array<i32>} : memref<32x64xf32, #tpu.memory_space<vmem>>, vector<32x64xf32>,
    return
  }
  func.func @transform_0(%arg0: i32) -> (i32, i32) {
    %c0_i32 = arith.constant 0 : i32
    %c0_i32_0 = arith.constant 0 : i32
    return %arg0, %c0_i32 : i32, i32
  }
  func.func @transform_1(%arg0: i32) -> (i32, i32) {
    %c0_i32 = arith.constant 0 : i32
    %c0_i32_0 = arith.constant 0 : i32
    %c0_i32_1 = arith.constant 0 : i32
    return %c0_i32, %c0_i32_0 : i32, i32
  }
  func.func @transform_2(%arg0: i32) -> (i32, i32) {
    %c0_i32 = arith.constant 0 : i32
    %c0_i32_0 = arith.constant 0 : i32
    %c0_i32_1 = arith.constant 0 : i32
    return %c0_i32, %c0_i32_0 : i32, i32
  }
  func.func @transform_3(%arg0: i32) -> (i32, i32) {
    %c0_i32 = arith.constant 0 : i32
    %c0_i32_0 = arith.constant 0 : i32
    %c0_i32_1 = arith.constant 0 : i32
    return %c0_i32, %c0_i32_0 : i32, i32
  }
  func.func @transform_4(%arg0: i32) -> (i32, i32) {
    %c0_i32 = arith.constant 0 : i32
    %c0_i32_0 = arith.constant 0 : i32
    %c0_i32_1 = arith.constant 0 : i32
    return %c0_i32, %c0_i32_0 : i32, i32
  }
  func.func @transform_5(%arg0: i32) -> (i32, i32) {
    %c0_i32 = arith.constant 0 : i32
    %c0_i32_0 = arith.constant 0 : i32
    return %arg0, %c0_i32 : i32, i32
  }
}

module attributes {stable_mosaic.version = 11 : i64} {
  func.func @_cv2_kernel(%arg0: i32, %arg1: memref<32x64xbf16, #tpu.memory_space<vmem>>, %arg2: memref<32x64xf32, #tpu.memory_space<vmem>>, %arg3: memref<64x128xbf16, #tpu.memory_space<vmem>>, %arg4: memref<64x128xbf16, #tpu.memory_space<vmem>>, %arg5: memref<1x128xf32, #tpu.memory_space<vmem>>, %arg6: memref<32x128xf32, #tpu.memory_space<vmem>>) attributes {dimension_semantics = [#tpu.dimension_semantics<parallel>], iteration_bounds = array<i64: 4>, scalar_prefetch = 0 : i64, scratch_operands = 0 : i64, tpu.core_type = #tpu.core_type<tc>, window_params = [{transform_indices = @transform_0, window_bounds = array<i64: 32, 64>}, {transform_indices = @transform_1, window_bounds = array<i64: 32, 64>}, {pipeline_mode = #tpu.pipeline_mode<synchronous>, transform_indices = @transform_2, window_bounds = array<i64: 64, 128>}, {pipeline_mode = #tpu.pipeline_mode<synchronous>, transform_indices = @transform_3, window_bounds = array<i64: 64, 128>}, {pipeline_mode = #tpu.pipeline_mode<synchronous>, transform_indices = @transform_4, window_bounds = array<i64: 1, 128>}, {transform_indices = @transform_5, window_bounds = array<i64: 32, 128>}]} {
    %c0 = arith.constant 0 : index
    %c0_0 = arith.constant 0 : index
    %0 = vector.load %arg1[%c0, %c0_0] : memref<32x64xbf16, #tpu.memory_space<vmem>>, vector<32x64xbf16>
    %c0_1 = arith.constant 0 : index
    %c0_2 = arith.constant 0 : index
    %1 = vector.load %arg3[%c0_1, %c0_2] : memref<64x128xbf16, #tpu.memory_space<vmem>>, vector<64x128xbf16>
    %cst = arith.constant dense<0.000000e+00> : vector<32x128xf32>
    %2 = tpu.matmul %0, %1, %cst {dimension_numbers = #tpu.dot_dimension_numbers<[1], [0], [0], [1], [0, 0, 1, 1], [], []>} : vector<32x64xbf16>, vector<64x128xbf16>, vector<32x128xf32> -> vector<32x128xf32>
    %c0_3 = arith.constant 0 : index
    %c0_4 = arith.constant 0 : index
    %3 = vector.load %arg2[%c0_3, %c0_4] : memref<32x64xf32, #tpu.memory_space<vmem>>, vector<32x64xf32>
    %4 = arith.truncf %3 : vector<32x64xf32> to vector<32x64xbf16>
    %c0_5 = arith.constant 0 : index
    %c0_6 = arith.constant 0 : index
    %5 = vector.load %arg4[%c0_5, %c0_6] : memref<64x128xbf16, #tpu.memory_space<vmem>>, vector<64x128xbf16>
    %cst_7 = arith.constant dense<0.000000e+00> : vector<32x128xf32>
    %6 = tpu.matmul %4, %5, %cst_7 {dimension_numbers = #tpu.dot_dimension_numbers<[1], [0], [0], [1], [0, 0, 1, 1], [], []>} : vector<32x64xbf16>, vector<64x128xbf16>, vector<32x128xf32> -> vector<32x128xf32>
    %7 = arith.addf %2, %6 : vector<32x128xf32>
    %c0_8 = arith.constant 0 : index
    %c0_9 = arith.constant 0 : index
    %8 = vector.load %arg5[%c0_8, %c0_9] : memref<1x128xf32, #tpu.memory_space<vmem>>, vector<1x128xf32>
    %9 = vector.broadcast %8 : vector<1x128xf32> to vector<32x128xf32>
    %10 = arith.addf %7, %9 : vector<32x128xf32>
    %11 = arith.negf %10 : vector<32x128xf32>
    %12 = math.exp %11 : vector<32x128xf32>
    %cst_10 = arith.constant 1.000000e+00 : f32
    %13 = vector.broadcast %cst_10 : f32 to vector<32x128xf32>
    %14 = arith.addf %13, %12 : vector<32x128xf32>
    %15 = arith.divf %13, %14 : vector<32x128xf32>
    %16 = arith.mulf %10, %15 : vector<32x128xf32>
    %c0_11 = arith.constant 0 : index
    %c0_12 = arith.constant 0 : index
    %17 = vector.load %arg6[%c0_11, %c0_12] : memref<32x128xf32, #tpu.memory_space<vmem>>, vector<32x128xf32>
    tpu.vector_store %arg6[%c0_11, %c0_12], %16 {strides = array<i32>} : memref<32x128xf32, #tpu.memory_space<vmem>>, vector<32x128xf32>,
    return
  }
  func.func @transform_0(%arg0: i32) -> (i32, i32) {
    %c0_i32 = arith.constant 0 : i32
    %c0_i32_0 = arith.constant 0 : i32
    return %arg0, %c0_i32 : i32, i32
  }
  func.func @transform_1(%arg0: i32) -> (i32, i32) {
    %c0_i32 = arith.constant 0 : i32
    %c0_i32_0 = arith.constant 0 : i32
    return %arg0, %c0_i32 : i32, i32
  }
  func.func @transform_2(%arg0: i32) -> (i32, i32) {
    %c0_i32 = arith.constant 0 : i32
    %c0_i32_0 = arith.constant 0 : i32
    %c0_i32_1 = arith.constant 0 : i32
    return %c0_i32, %c0_i32_0 : i32, i32
  }
  func.func @transform_3(%arg0: i32) -> (i32, i32) {
    %c0_i32 = arith.constant 0 : i32
    %c0_i32_0 = arith.constant 0 : i32
    %c0_i32_1 = arith.constant 0 : i32
    return %c0_i32, %c0_i32_0 : i32, i32
  }
  func.func @transform_4(%arg0: i32) -> (i32, i32) {
    %c0_i32 = arith.constant 0 : i32
    %c0_i32_0 = arith.constant 0 : i32
    %c0_i32_1 = arith.constant 0 : i32
    return %c0_i32, %c0_i32_0 : i32, i32
  }
  func.func @transform_5(%arg0: i32) -> (i32, i32) {
    %c0_i32 = arith.constant 0 : i32
    %c0_i32_0 = arith.constant 0 : i32
    return %arg0, %c0_i32 : i32, i32
  }
}

</mosaic_0001>

<bundles_post_ra>
// kernel: c2psa_forward.4
= control target key start
LH: loop header
LB: loop body
LE: loop exit
PB: predicated region body
PF: predicated region fallthrough
CT: control target
= control target key end

     0   :  { %10 = vsyncpa [#allocation3], 0  ;;  %s1001_s0 = inlined_call_operand.hbm [shape: f32[128,128], index: 0, kind: input, shape index: {}]   ;;  %s1002_s1 = inlined_call_operand.hbm [shape: bf16[128,128], index: 1, kind: input, shape index: {}]   ;;  %s1003_s2 = inlined_call_operand.vmem [shape: f32[1,128], index: 2, kind: input, shape index: {}]   ;;  %s1004_s3 = inlined_call_operand.vmem [shape: bf16[128,64], index: 3, kind: output, shape index: {0}]   ;;  %s1005_s4 = inlined_call_operand.vmem [shape: f32[128,64], index: 4, kind: output, shape index: {1}]  }
   0x1   :  { %12 = vsyncpa [#allocation3 + $0x1], 0 }
   0x2   :  { %13 = vsyncpa [#allocation5], 0  ;;  %s840_s15 = smov 0   ;;  %s842_s16 = smov 0  }
   0x3   :  { %s844_s17 = smov 0   ;;  %s846_s18 = smov 0  }
   0x4 LB: > { %s567_s19 = sadd.s32 4294967295, %s807_s18   ;;  %p39_p0 = scmp.ne.s32.totalorder %s799_s16, %s795_s15  ;;  %s807_s18 = sphi %s846_s18, %s1013_s18   ;;  %s803_s17 = sphi %s844_s17, %s1012_s17   ;;  %s799_s16 = sphi %s842_s16, %s1011_s16   ;;  %s795_s15 = sphi %s840_s15, %s1010_s15  }
   0x5   : > { %p862_p1 = scmp.eq.s32.totalorder %s567_s19, 0  ;;  %p569_p2 = scmp.ge.s32.totalorder %s807_s18, 1 }
   0x6   : > { %p144_p3 = scmp.lt.s32.totalorder %s807_s18, 5  ;;  %s155_s24 = sshll.u32 %s1002_s1, 4  ;;  %s156_s24 = int_to_ptr.hbm [resolvable:$true] %s155_s24 }
   0x7   : > { %p870_p4 = por %p862_p1, %p39_p0  ;;  %s809_s26 = smov [#allocation4]  }
   0x8   : > { %p877_p5 = pnand %p569_p2, %p144_p3  ;;  %s157_s27 = sshll.u32 %s809_s26, 4  ;;  %s158_s27 = int_to_ptr.vmem [resolvable:$true] %s157_s27 }
   0x9   : > { %s886_s28 = sadd.s32 1, %s807_s18   ;;  %s810_s29 = smov 64  }
   0xa   : > { %p643_p6 = pneg %p877_p5  ;;  %s811_s30 = smov 4  }
   0xb   : > { %s23_s5 = ssub.s32 %s807_s18, %s886_s28  ;;  %s26_s6 = sadd.s32 1, %s803_s17 }
   0xc   : > { %p644_p7 = pnand %p643_p6, %p862_p1  ;;  %p24_p8 = scmp.eq.s32.totalorder %s23_s5, 0 }
   0xd   : > { %p33_p9 = scmp.ne.s32.totalorder %s803_s17, %s799_s16  ;;  %p34_p10 = scmp.eq.s32.totalorder %s807_s18, 0 }
   0xe   : > { %646 = dma.hbm_to_vmem [thread:$0]  (!%p644_p7), %s156_s24, 1024, %s158_s27, [#allocation5], %s810_s29, %s810_s29, %s811_s30  }
   0xf   : > { %p652_p11 = scmp.lt.s32.totalorder %s807_s18, 4  ;;  %p35_p12 = por %p34_p10, %p33_p9 }
  0x10   : > { %s896_s7 = scalar_select %p24_p8, %s803_s17, %s26_s6  }
  0x11   : > { %s174_s8 = sand.u32 1, %s803_s17   ;;  %s620_s10 = sshll.u32 %s807_s18, 5 }
  0x12   : > { %s572_s9 = sshll.u32 %s174_s8, 5  ;;  %s183_s13 = scalar_lea.hbm %s1001_s0, %s620_s10 }
  0x13   : > { %s178_s14 = scalar_lea.vmem [#allocation2], %s572_s9  ;;  %s184_s22 = sshll.u32 %s183_s13, 4  ;;  %s185_s22 = int_to_ptr.hbm [resolvable:$true] %s184_s22 }
  0x14   : > { %s186_s15 = sshll.u32 %s178_s14, 4  ;;  %p903_p13 = pnand %p652_p11, %p35_p12  ;;  %s187_s15 = int_to_ptr.vmem [resolvable:$true] %s186_s15 }
  0x15   : > { %s175_s24 = scalar_lea.sflag [#allocation3], %s174_s8  ;;  %s739_s26 = sshra.s32 %s185_s22, 4  ;;  %s740_s26 = int_to_ptr.hbm [resolvable:$true] %s739_s26 }
  0x16   : > { %s741_s27 = scalar_lea.hbm %s740_s26, 32  ;;  %p743_p2 = pneg %p903_p13 }
  0x17   : > { %p742_p0 = scmp.ne.s32.totalorder %s740_s26, %s741_s27  ;;  %s746_s5 = scalar_lea.hbm %s1001_s0, 128 }
  0x18   : > { %p747_p7 = scmp.lt.s32.totalorder %s740_s26, %s1001_s0  ;;  %p748_p8 = scmp.lt.s32.totalorder %s746_s5, %s741_s27 }
  0x19   : > { %p744_p3 = pnand %p743_p2, %p742_p0 }
  0x1a   : > { %p749_p9 = por %p748_p8, %p747_p7 }
  0x1b   : > { %p745_p6 = pneg %p744_p3 }
  0x1d   : > { %p750_p10 = pnand %p749_p9, %p745_p6 }
  0x1f   : > { %753 = shalt.err (!%p750_p10)
}
  0x20   : > { %s812_s8 = smov 128   ;;  %s813_s10 = smov 8  }
  0x21   : > { %650 = dma.hbm_to_vmem [thread:$0]  (!%p903_p13), %s185_s22, 512, %s187_s15, %s175_s24, %s812_s8, %s812_s8, %s813_s10  }
  0x22   : > { %198 = sbr.rel (%p877_p5) target bundleno = 359 (0x167), region = 32  ;;  %s200_s11 = sand.u32 (!%p877_p5), 1, %s799_s16  }
  0x23   : > { %s576_s12 = sshll.u32 (!%p877_p5), %s200_s11, 5  ;;  %s201_s13 = scalar_lea.sflag (!%p877_p5), [#allocation3], %s200_s11 }
  0x24   : > { %s204_s14 = scalar_lea.vmem (!%p877_p5), [#allocation2], %s576_s12 }
  0x27   : > { %786 = dma.done.wait (%p870_p4), %s201_s13, 512  }
  0x28   : > { %788 = vsyncadd (%p870_p4), %s201_s13, 4294966784 }
  0x29   : > { %790 = dma.done.wait (%p862_p1), [#allocation5], 1024  }
  0x2a   : > { %792 = vsyncadd (%p862_p1), [#allocation5], 4294966272  ;;  %v628_v0 = vld [vmem:[#allocation4 + $0x38] sm:$0xff]  ;;  %v627_v1 = vld [vmem:[#allocation4 + $0x30] sm:$0xff]  ;;  %s578_s25 = sshll.u32 %s567_s19, 2  ;;  %vm430_vm4 = vcmask 519168  }
  0x2b   : > { %327 = vmatpush.bf16.msra.mxu0 %v628_v0  ;;  %629 = vmatpush.bf16.msra.mxu1 %v628_v0  ;;  %v626_v2 = vld [vmem:[#allocation4 + $0x28] sm:$0xff]  ;;  %v625_v3 = vld [vmem:[#allocation4 + $0x20] sm:$0xff]  ;;  %v624_v4 = vld [vmem:[#allocation4 + $0x18] sm:$0xff]  ;;  %p242_p1 = scmp.lt.s32.totalorder %s578_s25, 15  ;;  %s814_s23 = smov 64  }
  0x2c   : > { %v623_v5 = vld [vmem:[#allocation4 + $0x10] sm:$0xff]  ;;  %v622_v6 = vld [vmem:[#allocation4 + $0x8] sm:$0xff]  ;;  %v621_v7 = vld [vmem:[#allocation4] sm:$0xff] }
  0x2d   : > { %v253_v8 = vld [vmem:[%s204_s14] sm:$0xff]  ;;  %v254_v9 = vld [vmem:[%s204_s14 + $0x8] sm:$0xff]  ;;  %v255_v10 = vld [vmem:[%s204_s14 + $0x10] sm:$0xff]  ;;  %s1015_s25 = smov (!%p242_p1, %s578_s25), 15 }
  0x2e   : > { %v256_v11 = vld [vmem:[%s204_s14 + $0x18] sm:$0xff]  ;;  %v257_v12 = vpack.c.bf16 %v254_v9, %v253_v8  ;;  %v692_v14 = vld [vmem:[%s1003_s2] ss:$0 sm:$0xff]  ;;  %s579_s18 = sshll.u32 %s1015_s25, 2  ;;  %s581_s24 = sshll.u32 %s1015_s25, 3 }
  0x2f   : > { %328 = vmatpush.bf16.msra.mxu0 %v627_v1  ;;  %630 = vmatpush.bf16.msra.mxu1 %v627_v1  ;;  %v258_v13 = vpack.c.bf16 %v256_v11, %v255_v10  ;;  %s963_s22 = scalar_lea.vmem %s1004_s3, %s579_s18  ;;  %s251_s29 = scalar_lea.vmem %s1005_s4, %s581_s24 }
  0x33   : > { %329 = vmatpush.bf16.msra.mxu0 %v626_v2  ;;  %631 = vmatpush.bf16.msra.mxu1 %v626_v2 }
  0x37   : > { %330 = vmatpush.bf16.msra.mxu0 %v625_v3  ;;  %632 = vmatpush.bf16.msra.mxu1 %v625_v3 }
  0x3b   : > { %331 = vmatpush.bf16.msra.mxu0 %v624_v4  ;;  %633 = vmatpush.bf16.msra.mxu1 %v624_v4 }
  0x3f   : > { %332 = vmatpush.bf16.msra.mxu0 %v623_v5  ;;  %634 = vmatpush.bf16.msra.mxu1 %v623_v5 }
  0x43   : > { %333 = vmatpush.bf16.msra.mxu0 %v622_v6  ;;  %635 = vmatpush.bf16.msra.mxu1 %v622_v6 }
  0x47   : > { %334 = vmatpush.bf16.msra.mxu0 %v621_v7  ;;  %636 = vmatpush.bf16.msra.mxu1 %v621_v7 }
  0x4a   : > { %335 = vmatmul.bf16.vlgmr.msra.gmra.mxu0 %v257_v12  ;;  %340 = vmatmul.bf16.vlgmr.msra.gmra.mxu1 %v258_v13 }
  0xc7   : > { %v336_v15 = vpop.f32.mrf.mxu0  ;;  %v341_v16 = vpop.f32.mrf.mxu1 }
  0xc8   : > { %v931_v17 = vadd.f32 %v692_v14, %v336_v15  ;;  %v933_v18 = vadd.f32 %v692_v14, %v341_v16 }
  0xca   : > { %v614_v19 = vmul.f32 -1.442695, %v931_v17  ;;  %v616_v20 = vmul.f32 -1.442695, %v933_v18 }
  0xcc   : > { %693 = vpow2.f32 %v614_v19 }
  0xcd   : > { %695 = vpow2.f32 %v616_v20 }
  0xcf   : > { %v338_v21 = vpop.f32.mrf.mxu0  ;;  %v343_v22 = vpop.f32.mrf.mxu1 }
  0xd0   : > { %v937_v23 = vadd.f32 %v692_v14, %v338_v21  ;;  %v939_v24 = vadd.f32 %v692_v14, %v343_v22 }
  0xd2   : > { %v694_v25 = vpop.eup %693  ;;  %v615_v26 = vmul.f32 -1.442695, %v937_v23  ;;  %v617_v29 = vmul.f32 -1.442695, %v939_v24 }
  0xd3   : > { %v696_v27 = vpop.eup %695  ;;  %v358_v28 = vadd.f32 1.0, %v694_v25 }
  0xd4   : > { %v360_v30 = vadd.f32 1.0, %v696_v27  ;;  %697 = vpow2.f32 %v615_v26 }
  0xd5   : > { %699 = vrcp.f32 %v358_v28  ;;  %v373_v40 = vand.u32 2147483648, %v358_v28  ;;  %v371_v43 = vand.u32 2147483647, %v358_v28  ;;  %vm367_vm1 = vweird.f32 %v358_v28 }
  0xd6   : > { %701 = vrcp.f32 %v360_v30  ;;  %v403_v44 = vand.u32 2147483648, %v360_v30  ;;  %v401_v47 = vand.u32 2147483647, %v360_v30  ;;  %vm397_vm5 = vweird.f32 %v360_v30 }
  0xd7   : > { %703 = vpow2.f32 %v617_v29  ;;  %v374_v50 = vor.u32 1.1754944e-38, %v373_v40  ;;  %vm372_vm6 = vcmp.eq.f32.partialorder %v371_v43, 8.507059e+37 }
  0xd8   : > { %v404_v56 = vor.u32 1.1754944e-38, %v403_v44  ;;  %vm402_vm8 = vcmp.eq.f32.partialorder %v401_v47, 8.507059e+37 }
  0xda   : > { %v698_v31 = vpop.eup %697 }
  0xdb   : > { %v700_v32 = vpop.eup %699  ;;  %v945_v33 = vadd.f32 1.0, %v698_v31 }
  0xdc   : > { %v702_v34 = vpop.eup %701  ;;  %v363_v35 = vmul.f32 %v700_v32, %v358_v28  ;;  %vm368_vm0 = vweird.f32 %v700_v32 }
  0xdd   : > { %v704_v36 = vpop.eup %703  ;;  %705 = vrcp.f32 %v945_v33  ;;  %v393_v38 = vmul.f32 %v702_v34, %v360_v30  ;;  %vm398_vm2 = vweird.f32 %v702_v34  ;;  %vm369_vm3 = vmor %vm367_vm1, %vm368_vm0  ;;  %v388_v55 = vand.u32 2147483648, %v945_v33 }
  0xde   : > { %v948_v37 = vadd.f32 1.0, %v704_v36  ;;  %v364_v39 = vsub.f32 1.0, %v363_v35  ;;  %vm399_vm7 = vmor %vm397_vm5, %vm398_vm2  ;;  %v386_v62 = vand.u32 2147483647, %v945_v33  ;;  %vm382_vm10 = vweird.f32 %v945_v33 }
  0xdf   : > { %v394_v41 = vsub.f32 1.0, %v393_v38  ;;  %v389_v4 = vor.u32 1.1754944e-38, %v388_v55  ;;  %vm451_vm1 = vcmask 523264  }
  0xe0   : > { %707 = vrcp.f32 %v948_v37  ;;  %v365_v42 = vmul.f32 %v700_v32, %v364_v39  ;;  %v418_v5 = vand.u32 2147483648, %v948_v37  ;;  %v416_v7 = vand.u32 2147483647, %v948_v37 }
  0xe1   : > { %v395_v46 = vmul.f32 %v702_v34, %v394_v41  ;;  %vm387_vm13 = vcmp.eq.f32.partialorder %v386_v62, 8.507059e+37  ;;  %vm412_vm14 = vweird.f32 %v948_v37 }
  0xe2   : > { %v366_v48 = vadd.f32 %v700_v32, %v365_v42  ;;  %v419_v13 = vor.u32 1.1754944e-38, %v418_v5  ;;  %vm417_vm0 = vcmp.eq.f32.partialorder %v416_v7, 8.507059e+37 }
  0xe3   : > { %v706_v45 = vpop.eup %705  ;;  %v396_v51 = vadd.f32 %v702_v34, %v395_v46 }
  0xe4   : > { %v378_v49 = vmul.f32 %v706_v45, %v945_v33  ;;  %v370_v52 = vsel %vm369_vm3, %v700_v32, %v366_v48  ;;  %vm383_vm9 = vweird.f32 %v706_v45 }
  0xe5   : > { %v375_v57 = vsel %vm372_vm6, %v374_v50, %v370_v52  ;;  %v400_v59 = vsel %vm399_vm7, %v702_v34, %v396_v51  ;;  %vm384_vm11 = vmor %vm382_vm10, %vm383_vm9 }
  0xe6   : > { %v708_v53 = vpop.eup %707  ;;  %v379_v54 = vsub.f32 1.0, %v378_v49  ;;  %v422_v60 = vmul.f32 %v375_v57, %v931_v17  ;;  %v405_v63 = vsel %vm402_vm8, %v404_v56, %v400_v59 }
  0xe7   : > { %v408_v58 = vmul.f32 %v708_v53, %v948_v37  ;;  %v424_v1 = vmul.f32 %v405_v63, %v933_v18  ;;  %vm413_vm12 = vweird.f32 %v708_v53 }
  0xe8   : > { %v380_v61 = vmul.f32 %v706_v45, %v379_v54  ;;  %439 = vrot.lane.b32.xlu0 %v422_v60, %s814_s23  ;;  %v426_v2 = vpack.c.bf16 %v422_v60, %v422_v60  ;;  %vm414_vm15 = vmor %vm412_vm14, %vm413_vm12 }
  0xe9   : > { %v409_v0 = vsub.f32 1.0, %v408_v58  ;;  %443 = vrot.lane.b32.xlu1 %v424_v1, %s814_s23  ;;  %v428_v8 = vpack.c.bf16 %v424_v1, %v424_v1 }
  0xea   : > { %v381_v3 = vadd.f32 %v706_v45, %v380_v61  ;;  %431 = vst.msk [vmem:[%s963_s22] sm:$0xf] %vm430_vm4, %v426_v2 }
  0xeb   : > { %v410_v6 = vmul.f32 %v708_v53, %v409_v0  ;;  %433 = vst.msk [vmem:[%s963_s22 + $0x8] sm:$0xf] %vm430_vm4, %v428_v8 }
  0xec   : > { %v385_v9 = vsel %vm384_vm11, %v706_v45, %v381_v3 }
  0xed   : > { %v390_v10 = vsel %vm387_vm13, %v389_v4, %v385_v9  ;;  %v411_v11 = vadd.f32 %v708_v53, %v410_v6 }
  0xee   : > { %v423_v12 = vmul.f32 %v390_v10, %v937_v23 }
  0xef   : > { %v415_v14 = vsel %vm414_vm15, %v708_v53, %v411_v11 }
  0xf0   : > { %v427_v15 = vpack.c.bf16 %v423_v12, %v423_v12  ;;  %v420_v16 = vsel %vm417_vm0, %v419_v13, %v415_v14  ;;  %441 = vrot.lane.b32.xlu0 %v423_v12, %s814_s23 }
  0xf1   : > { %v425_v17 = vmul.f32 %v420_v16, %v939_v24 }
  0xf2   : > { %432 = vst.msk [vmem:[%s963_s22 + $0x4] sm:$0xf] %vm430_vm4, %v427_v15 }
  0xf3   : > { %v429_v18 = vpack.c.bf16 %v425_v17, %v425_v17  ;;  %445 = vrot.lane.b32.xlu1 %v425_v17, %s814_s23 }
  0xf5   : > { %434 = vst.msk [vmem:[%s963_s22 + $0xc] sm:$0xf] %vm430_vm4, %v429_v18 }
 0x15a   : > { %v440_v19 = vpop.permute.xlu0 %439 }
 0x15b   : > { %452 = vst.msk [vmem:[%s251_s29] sm:$0xff] %vm451_vm1, %v440_v19  ;;  %v444_v20 = vpop.permute.xlu1 %443 }
 0x15c   : > { %454 = vst.msk [vmem:[%s251_s29 + $0x10] sm:$0xff] %vm451_vm1, %v444_v20 }
 0x162   : > { %v442_v21 = vpop.permute.xlu0 %441 }
 0x163   : > { %453 = vst.msk [vmem:[%s251_s29 + $0x8] sm:$0xff] %vm451_vm1, %v442_v21 }
 0x165   : > { %v446_v22 = vpop.permute.xlu1 %445 }
 0x166   : > { %455 = vst.msk [vmem:[%s251_s29 + $0x18] sm:$0xff] %vm451_vm1, %v446_v22 }
 0x167 PF: > { %p16_p4 = scmp.ge.s32.totalorder %s886_s28, 6   ;;  %s1010_s15 = smov %s799_s16 }
 0x168   : > { %s1011_s16 = smov %s803_s17  ;;  %s1012_s17 = smov %s896_s7 }
 0x169   : > { %s1013_s18 = smov %s886_s28  ;;  %18 = sbr.rel (!%p16_p4) target bundleno = 4 (0x4), region = 88 }
 0x16e   :  { %495 = vsyncpa [#allocation3], 1 }
 0x16f   :  { %497 = vsyncpa [#allocation3 + $0x1], 1 }
 0x170   :  { %498 = vsyncpa [#allocation5], 1 }

// kernel: c2psa_forward.6
= control target key start
LH: loop header
LB: loop body
LE: loop exit
PB: predicated region body
PF: predicated region fallthrough
CT: control target
= control target key end

     0   :  { %s683_s18 = smov 0   ;;  %s799_s0 = inlined_call_operand.vmem [shape: f32[128,64], index: 0, kind: input, shape index: {}, may-alias: {0,5}]   ;;  %s800_s1 = inlined_call_operand.vmem [shape: bf16[64,128], index: 1, kind: input, shape index: {}]   ;;  %s801_s2 = inlined_call_operand.vmem [shape: f32[1,128], index: 2, kind: input, shape index: {}]   ;;  %s802_s3 = inlined_call_operand.vmem [shape: bf16[128,64], index: 3, kind: input, shape index: {}]   ;;  %s803_s4 = inlined_call_operand.vmem [shape: f32[1,64], index: 4, kind: input, shape index: {}]   ;;  %s804_s5 = inlined_call_operand.vmem [shape: f32[128,64], index: 5, kind: output, shape index: {}, may-alias: {0,5}]  }
   0x1 LB: > { %s530_s19 = sadd.s32 4294967295, %s651_s18   ;;  %p534_p0 = scmp.ge.s32.totalorder %s651_s18, 1  ;;  %s651_s18 = sphi %s683_s18, %s15_s18  }
   0x2   : > { %p188_p1 = scmp.lt.s32.totalorder %s651_s18, 5 }
   0x4   : > { %p189_p2 = pnand %p534_p0, %p188_p1 }
   0x5   : > { %s535_s22 = sshll.u32 (!%p189_p2), %s530_s19, 2 }
   0x6   : > { %192 = sbr.rel (%p189_p2) target bundleno = 346 (0x15a), region = 40  ;;  %p217_p3 = scmp.lt.s32.totalorder (!%p189_p2), %s535_s22, 15 }
   0xb   : > { %v598_v0 = vld [vmem:[%s800_s1 + $0x18] sm:$0xff]  ;;  %v597_v1 = vld [vmem:[%s800_s1 + $0x10] sm:$0xff]  ;;  %s810_s22 = smov (!%p217_p3, %s535_s22), 15  ;;  %v596_v2 = vld [vmem:[%s800_s1 + $0x8] sm:$0xff]  ;;  %vm271_vm0 = vcmask 523264  }
   0xc   : > { %282 = vmatpush.bf16.msra.mxu0 %v598_v0  ;;  %607 = vmatpush.bf16.msra.mxu3 %v598_v0  ;;  %s536_s25 = sshll.u32 %s810_s22, 3  ;;  %v595_v3 = vld [vmem:[%s800_s1] sm:$0xff]  ;;  %v606_v10 = vld [vmem:[%s802_s3 + $0x38] sm:$0xff]  ;;  %v605_v11 = vld [vmem:[%s802_s3 + $0x30] sm:$0xff] }
   0xd   : > { %s220_s30 = scalar_lea.vmem %s799_s0, %s536_s25  ;;  %447 = vmatpush.bf16.msra.mxu1 %v606_v10  ;;  %611 = vmatpush.bf16.msra.mxu2 %v606_v10  ;;  %v604_v12 = vld [vmem:[%s802_s3 + $0x28] sm:$0xff]  ;;  %v603_v13 = vld [vmem:[%s802_s3 + $0x20] sm:$0xff]  ;;  %v602_v14 = vld [vmem:[%s802_s3 + $0x18] sm:$0xff]  ;;  %s226_s8 = scalar_lea.vmem %s804_s5, %s536_s25 }
   0xe   : > { %v711_v4 = vld [vmem:[%s220_s30] sm:$0xff]  ;;  %v713_v5 = vld [vmem:[%s220_s30 + $0x8] sm:$0xff]  ;;  %v715_v6 = vld [vmem:[%s220_s30 + $0x10] sm:$0xff] }
   0xf   : > { %v717_v7 = vld [vmem:[%s220_s30 + $0x18] sm:$0xff]  ;;  %v233_v8 = vpack.c.bf16 %v713_v5, %v711_v4  ;;  %v627_v15 = vld [vmem:[%s801_s2] ss:$0 sm:$0xff]  ;;  %v601_v16 = vld [vmem:[%s802_s3 + $0x10] sm:$0xff] }
  0x10   : > { %283 = vmatpush.bf16.msra.mxu0 %v597_v1  ;;  %608 = vmatpush.bf16.msra.mxu3 %v597_v1  ;;  %v234_v9 = vpack.c.bf16 %v717_v7, %v715_v6  ;;  %v600_v20 = vld [vmem:[%s802_s3 + $0x8] sm:$0xff]  ;;  %v599_v23 = vld [vmem:[%s802_s3] sm:$0xff] }
  0x11   : > { %448 = vmatpush.bf16.msra.mxu1 %v605_v11  ;;  %612 = vmatpush.bf16.msra.mxu2 %v605_v11 }
  0x14   : > { %284 = vmatpush.bf16.msra.mxu0 %v596_v2  ;;  %609 = vmatpush.bf16.msra.mxu3 %v596_v2 }
  0x15   : > { %449 = vmatpush.bf16.msra.mxu1 %v604_v12  ;;  %613 = vmatpush.bf16.msra.mxu2 %v604_v12 }
  0x18   : > { %285 = vmatpush.bf16.msra.mxu0 %v595_v3  ;;  %610 = vmatpush.bf16.msra.mxu3 %v595_v3 }
  0x19   : > { %450 = vmatpush.bf16.msra.mxu1 %v603_v13  ;;  %614 = vmatpush.bf16.msra.mxu2 %v603_v13 }
  0x1b   : > { %555 = vmatmul.msk.bf16.vlgmr.msra.gmra.mxu0 %vm271_vm0, %v233_v8  ;;  %556 = vmatmul.msk.bf16.vlgmr.msra.gmra.mxu3 %vm271_vm0, %v234_v9 }
  0x1d   : > { %451 = vmatpush.bf16.msra.mxu1 %v602_v14  ;;  %615 = vmatpush.bf16.msra.mxu2 %v602_v14 }
  0x21   : > { %452 = vmatpush.bf16.msra.mxu1 %v601_v16  ;;  %616 = vmatpush.bf16.msra.mxu2 %v601_v16 }
  0x25   : > { %453 = vmatpush.bf16.msra.mxu1 %v600_v20  ;;  %617 = vmatpush.bf16.msra.mxu2 %v600_v20 }
  0x29   : > { %454 = vmatpush.bf16.msra.mxu1 %v599_v23  ;;  %618 = vmatpush.bf16.msra.mxu2 %v599_v23 }
  0x98   : > { %v287_v17 = vpop.f32.mrf.mxu0 }
  0x99   : > { %v746_v18 = vadd.f32 %v627_v15, %v287_v17 }
  0x9b   : > { %v557_v19 = vmul.f32 -1.442695, %v746_v18 }
  0x9d   : > { %629 = vpow2.f32 %v557_v19 }
  0x9e   : > { %v292_v21 = vpop.f32.mrf.mxu3 }
  0x9f   : > { %v752_v22 = vadd.f32 %v627_v15, %v292_v21 }
  0xa0   : > { %v289_v24 = vpop.f32.mrf.mxu0 }
  0xa1   : > { %v559_v25 = vmul.f32 -1.442695, %v752_v22  ;;  %v758_v26 = vadd.f32 %v627_v15, %v289_v24 }
  0xa3   : > { %v630_v27 = vpop.eup %629  ;;  %631 = vpow2.f32 %v559_v25  ;;  %v558_v28 = vmul.f32 -1.442695, %v758_v26 }
  0xa4   : > { %v309_v29 = vadd.f32 1.0, %v630_v27 }
  0xa5   : > { %633 = vpow2.f32 %v558_v28 }
  0xa6   : > { %635 = vrcp.f32 %v309_v29  ;;  %v294_v30 = vpop.f32.mrf.mxu3  ;;  %vm318_vm1 = vweird.f32 %v309_v29  ;;  %v322_v46 = vand.u32 2147483647, %v309_v29  ;;  %v324_v47 = vand.u32 2147483648, %v309_v29 }
  0xa7   : > { %v761_v31 = vadd.f32 %v627_v15, %v294_v30 }
  0xa8   : > { %vm323_vm4 = vcmp.eq.f32.partialorder %v322_v46, 8.507059e+37  ;;  %v325_v54 = vor.u32 1.1754944e-38, %v324_v47 }
  0xa9   : > { %v632_v32 = vpop.eup %631  ;;  %v560_v33 = vmul.f32 -1.442695, %v761_v31 }
  0xaa   : > { %v311_v34 = vadd.f32 1.0, %v632_v32 }
  0xab   : > { %v634_v35 = vpop.eup %633  ;;  %637 = vpow2.f32 %v560_v33 }
  0xac   : > { %v636_v36 = vpop.eup %635  ;;  %639 = vrcp.f32 %v311_v34  ;;  %v310_v38 = vadd.f32 1.0, %v634_v35  ;;  %vm348_vm7 = vweird.f32 %v311_v34  ;;  %v354_v62 = vand.u32 2147483648, %v311_v34 }
  0xad   : > { %v314_v37 = vmul.f32 %v636_v36, %v309_v29  ;;  %vm319_vm2 = vweird.f32 %v636_v36  ;;  %v352_v1 = vand.u32 2147483647, %v311_v34 }
  0xae   : > { %641 = vrcp.f32 %v310_v38  ;;  %vm764_vm3 = vmor %vm318_vm1, %vm319_vm2  ;;  %v339_v55 = vand.u32 2147483648, %v310_v38  ;;  %v337_v59 = vand.u32 2147483647, %v310_v38  ;;  %vm333_vm8 = vweird.f32 %v310_v38 }
  0xaf   : > { %v315_v39 = vsub.f32 1.0, %v314_v37  ;;  %v355_v16 = vor.u32 1.1754944e-38, %v354_v62  ;;  %vm353_vm13 = vcmp.eq.f32.partialorder %v352_v1, 8.507059e+37 }
  0xb0   : > { %v340_v2 = vor.u32 1.1754944e-38, %v339_v55  ;;  %vm338_vm11 = vcmp.eq.f32.partialorder %v337_v59, 8.507059e+37 }
  0xb1   : > { %v638_v40 = vpop.eup %637  ;;  %v316_v42 = vmul.f32 %v636_v36, %v315_v39 }
  0xb2   : > { %v640_v41 = vpop.eup %639  ;;  %v312_v43 = vadd.f32 1.0, %v638_v40 }
  0xb3   : > { %v344_v44 = vmul.f32 %v640_v41, %v311_v34  ;;  %v317_v49 = vadd.f32 %v636_v36, %v316_v42  ;;  %vm349_vm6 = vweird.f32 %v640_v41 }
  0xb4   : > { %643 = vrcp.f32 %v312_v43  ;;  %v642_v45 = vpop.eup %641  ;;  %vm770_vm10 = vmor %vm348_vm7, %vm349_vm6  ;;  %v367_v10 = vand.u32 2147483647, %v312_v43  ;;  %v369_v11 = vand.u32 2147483648, %v312_v43  ;;  %vm363_vm14 = vweird.f32 %v312_v43 }
  0xb5   : > { %v345_v48 = vsub.f32 1.0, %v344_v44  ;;  %v329_v50 = vmul.f32 %v642_v45, %v310_v38  ;;  %v321_v57 = vsel %vm764_vm3, %v636_v36, %v317_v49  ;;  %vm334_vm5 = vweird.f32 %v642_v45 }
  0xb6   : > { %v326_v0 = vsel %vm323_vm4, %v325_v54, %v321_v57  ;;  %vm335_vm9 = vmor %vm333_vm8, %vm334_vm5  ;;  %v370_v21 = vor.u32 1.1754944e-38, %v369_v11  ;;  %vm368_vm1 = vcmp.eq.f32.partialorder %v367_v10, 8.507059e+37 }
  0xb7   : > { %v346_v52 = vmul.f32 %v640_v41, %v345_v48  ;;  %v330_v53 = vsub.f32 1.0, %v329_v50  ;;  %v373_v15 = vmul.f32 %v326_v0, %v746_v18 }
  0xb9   : > { %v331_v58 = vmul.f32 %v642_v45, %v330_v53  ;;  %v347_v60 = vadd.f32 %v640_v41, %v346_v52 }
  0xba   : > { %v644_v56 = vpop.eup %643 }
  0xbb   : > { %v359_v61 = vmul.f32 %v644_v56, %v312_v43  ;;  %v332_v63 = vadd.f32 %v642_v45, %v331_v58  ;;  %v351_v12 = vsel %vm770_vm10, %v640_v41, %v347_v60  ;;  %vm364_vm12 = vweird.f32 %v644_v56 }
  0xbc   : > { %v356_v20 = vsel %vm353_vm13, %v355_v16, %v351_v12  ;;  %vm365_vm15 = vmor %vm363_vm14, %vm364_vm12 }
  0xbd   : > { %v360_v3 = vsub.f32 1.0, %v359_v61  ;;  %v336_v9 = vsel %vm335_vm9, %v642_v45, %v332_v63  ;;  %v375_v27 = vmul.f32 %v356_v20, %v752_v22 }
  0xbe   : > { %v341_v13 = vsel %vm338_vm11, %v340_v2, %v336_v9 }
  0xbf   : > { %v361_v14 = vmul.f32 %v644_v56, %v360_v3  ;;  %v374_v17 = vmul.f32 %v341_v13, %v758_v26  ;;  %v628_v26 = vld [vmem:[%s803_s4] ss:$0 sm:$0xff] }
  0xc1   : > { %v362_v19 = vadd.f32 %v644_v56, %v361_v14  ;;  %v377_v23 = vpack.c.bf16 %v374_v17, %v373_v15 }
  0xc3   : > { %v366_v24 = vsel %vm365_vm15, %v644_v56, %v362_v19  ;;  %455 = vmatmul.bf16.vlgmr.msra.gmra.mxu1 %v377_v23 }
  0xc4   : > { %v371_v25 = vsel %vm368_vm1, %v370_v21, %v366_v24 }
  0xc5   : > { %v376_v28 = vmul.f32 %v371_v25, %v761_v31 }
  0xc7   : > { %v378_v18 = vpack.c.bf16 %v376_v28, %v375_v27 }
  0xc9   : > { %460 = vmatmul.bf16.vlgmr.msra.gmra.mxu2 %v378_v18 }
 0x140   : > { %v456_v29 = vpop.f32.mrf.mxu1 }
 0x141   : > { %v457_v30 = vadd.f32 %v628_v26, %v456_v29 }
 0x143   : > { %v466_v32 = vadd.f32 %v457_v30, %v711_v4 }
 0x145   : > { %470 = vst.msk [vmem:[%s226_s8] sm:$0xff] %vm271_vm0, %v466_v32 }
 0x148   : > { %v458_v22 = vpop.f32.mrf.mxu1 }
 0x149   : > { %v459_v33 = vadd.f32 %v628_v26, %v458_v22 }
 0x14b   : > { %v467_v31 = vadd.f32 %v459_v33, %v713_v5 }
 0x14c   : > { %v461_v34 = vpop.f32.mrf.mxu2 }
 0x14d   : > { %v462_v35 = vadd.f32 %v628_v26, %v461_v34  ;;  %471 = vst.msk [vmem:[%s226_s8 + $0x8] sm:$0xff] %vm271_vm0, %v467_v31 }
 0x14f   : > { %v468_v36 = vadd.f32 %v462_v35, %v715_v6 }
 0x151   : > { %472 = vst.msk [vmem:[%s226_s8 + $0x10] sm:$0xff] %vm271_vm0, %v468_v36 }
 0x154   : > { %v463_v37 = vpop.f32.mrf.mxu2 }
 0x155   : > { %v464_v38 = vadd.f32 %v628_v26, %v463_v37 }
 0x157   : > { %v469_v39 = vadd.f32 %v464_v38, %v717_v7 }
 0x159   : > { %473 = vst.msk [vmem:[%s226_s8 + $0x18] sm:$0xff] %vm271_vm0, %v469_v39 }
 0x15a PF: > { %s15_s18 = sadd.s32 1, %s651_s18  }
 0x15b   : > { %p12_p4 = scmp.ge.s32.totalorder %s15_s18, 6  }
 0x15d   :  { %14 = sbr.rel (!%p12_p4) target bundleno = 1 (0x1), region = 70 }

// kernel: c2psa_forward.5
= control target key start
LH: loop header
LB: loop body
LE: loop exit
PB: predicated region body
PF: predicated region fallthrough
CT: control target
= control target key end

     0   :  { %s1412_s30 = smov 0   ;;  %s1956_s0 = inlined_call_operand.vmem [shape: f32[2,64,64], index: 0, kind: input, shape index: {}, may-alias: {0,9}]   ;;  %s1957_s1 = inlined_call_operand.vmem [shape: bf16[64,128], index: 1, kind: input, shape index: {}]   ;;  %s1958_s2 = inlined_call_operand.vmem [shape: f32[1,128], index: 2, kind: input, shape index: {}]   ;;  %s1959_s3 = inlined_call_operand.vmem [shape: f32[9,64], index: 3, kind: input, shape index: {}]   ;;  %s1960_s4 = inlined_call_operand.vmem [shape: f32[1,64], index: 4, kind: input, shape index: {}]   ;;  %s1961_s5 = inlined_call_operand.vmem [shape: bf16[64,64], index: 5, kind: input, shape index: {}]   ;;  %s1962_s6 = inlined_call_operand.vmem [shape: f32[1,64], index: 6, kind: input, shape index: {}]   ;;  %s1963_s7 = inlined_call_operand.vmem [shape: f32[64,1], index: 7, kind: input, shape index: {}]   ;;  %s1964_s8 = inlined_call_operand.vmem [shape: f32[64,1], index: 8, kind: input, shape index: {}]   ;;  %s1965_s9 = inlined_call_operand.vmem [shape: f32[2,64,64], index: 9, kind: output, shape index: {}, may-alias: {0,9}]  }
   0x1 LB: > { %s1229_s10 = sadd.s32 4294967295, %s1356_s30   ;;  %p1233_p0 = scmp.ge.s32.totalorder %s1356_s30, 1  ;;  %s1356_s30 = sphi %s1412_s30, %s19_s30  }
   0x2   : > { %p287_p1 = scmp.lt.s32.totalorder %s1356_s30, 3 }
   0x4   : > { %p288_p2 = pnand %p1233_p0, %p287_p1 }
   0x5   : > { %p323_p3 = scmp.lt.s32.totalorder (!%p288_p2), %s1229_s10, 1  ;;  %s1358_s25 = smov (!%p288_p2), 96  }
   0x6   : > { %291 = sbr.rel (%p288_p2) target bundleno = 1133 (0x46d), region = 56  ;;  %s1359_s26 = smov (!%p288_p2), 64  }
   0xb   : > { %v1293_v0 = vld [vmem:[%s1957_s1 + $0x18] sm:$0xff]  ;;  %v1292_v1 = vld [vmem:[%s1957_s1 + $0x10] sm:$0xff]  ;;  %s1967_s10 = smov (!%p323_p3, %s1229_s10), 1  ;;  %v1291_v2 = vld [vmem:[%s1957_s1 + $0x8] sm:$0xff]  ;;  %vm382_vm0 = vcmask 523264   ;;  %vm854_vm1 = vcmask 261120  }
   0xc   : > { %399 = vmatpush.bf16.msra.mxu0 %v1293_v0  ;;  %s1288_s15 = sshll.u32 %s1967_s10, 6  ;;  %v1290_v3 = vld [vmem:[%s1957_s1] sm:$0xff]  ;;  %vm434_vm2 = vcmask 517120  }
   0xd   : > { %s1437_s20 = scalar_lea.vmem %s1956_s0, %s1288_s15  ;;  %v1313_v19 = vld [vmem:[%s1958_s2] ss:$0 sm:$0xff]  ;;  %s1927_s27 = scalar_lea.vmem %s1965_s9, %s1288_s15 }
   0xe   : > { %v334_v4 = vld [vmem:[%s1437_s20] sm:$0xff]  ;;  %v1444_v5 = vld [vmem:[%s1437_s20 + $0x8] sm:$0xff]  ;;  %v1449_v7 = vld [vmem:[%s1437_s20 + $0x10] sm:$0xff] }
   0xf   : > { %v342_v6 = vpack.c.bf16 %v1444_v5, %v334_v4  ;;  %v1452_v8 = vld [vmem:[%s1437_s20 + $0x18] sm:$0xff]  ;;  %v1458_v10 = vld [vmem:[%s1437_s20 + $0x20] sm:$0xff]  ;;  %v1461_v11 = vld [vmem:[%s1437_s20 + $0x28] sm:$0xff] }
  0x10   : > { %400 = vmatpush.bf16.msra.mxu0 %v1292_v1  ;;  %v343_v9 = vpack.c.bf16 %v1452_v8, %v1449_v7  ;;  %v344_v12 = vpack.c.bf16 %v1461_v11, %v1458_v10  ;;  %v1467_v13 = vld [vmem:[%s1437_s20 + $0x30] sm:$0xff]  ;;  %v1470_v14 = vld [vmem:[%s1437_s20 + $0x38] sm:$0xff] }
  0x11   : > { %v345_v15 = vpack.c.bf16 %v1470_v14, %v1467_v13 }
  0x14   : > { %401 = vmatpush.bf16.msra.mxu0 %v1291_v2 }
  0x18   : > { %402 = vmatpush.bf16.msra.mxu0 %v1290_v3 }
  0x1b   : > { %1254 = vmatmul.msk.bf16.vlgmr.msra.gmra.mxu0 %vm382_vm0, %v342_v6 }
  0x2b   : > { %1255 = vmatmul.msk.bf16.gmra.mxu0 %vm382_vm0, %v343_v9 }
  0x3b   : > { %1256 = vmatmul.msk.bf16.gmra.mxu0 %vm382_vm0, %v344_v12 }
  0x4b   : > { %1257 = vmatmul.msk.bf16.gmra.mxu0 %vm382_vm0, %v345_v15 }
  0x98   : > { %v404_v16 = vpop.f32.mrf.mxu0 }
  0x99   : > { %v1489_v26 = vadd.f32 %v1313_v19, %v404_v16 }
  0xa0   : > { %v406_v17 = vpop.f32.mrf.mxu0 }
  0xa1   : > { %v1487_v24 = vadd.f32 %v1313_v19, %v406_v17 }
  0xa3   : > { %v838_v27 = vpack.c.bf16 %v1487_v24, %v1489_v26 }
  0xa8   : > { %v409_v18 = vpop.f32.mrf.mxu0 }
  0xa9   : > { %v1478_v21 = vadd.f32 %v1313_v19, %v409_v18 }
  0xb0   : > { %v411_v20 = vpop.f32.mrf.mxu0 }
  0xb1   : > { %v1480_v22 = vadd.f32 %v1313_v19, %v411_v20 }
  0xb3   : > { %v1484_v23 = vpack.c.bf16 %v1480_v22, %v1478_v21 }
  0xb5   : > { %848 = vrot.lane.b32.xlu1 %v1484_v23, %s1358_s25 }
  0xb8   : > { %v414_v25 = vpop.f32.mrf.mxu0 }
  0xb9   : > { %v1502_v35 = vadd.f32 %v1313_v19, %v414_v25 }
  0xbd   : > { %846 = vrot.lane.b32.xlu1 %v838_v27, %s1358_s25 }
  0xc0   : > { %v416_v28 = vpop.f32.mrf.mxu0 }
  0xc1   : > { %v1500_v34 = vadd.f32 %v1313_v19, %v416_v28 }
  0xc3   : > { %v1506_v36 = vpack.c.bf16 %v1500_v34, %v1502_v35 }
  0xc8   : > { %v419_v29 = vpop.f32.mrf.mxu0 }
  0xc9   : > { %v1493_v31 = vadd.f32 %v1313_v19, %v419_v29 }
  0xd0   : > { %v421_v30 = vpop.f32.mrf.mxu0 }
  0xd1   : > { %v1495_v32 = vadd.f32 %v1313_v19, %v421_v30 }
  0xd3   : > { %v841_v33 = vpack.c.bf16 %v1495_v32, %v1493_v31 }
  0xd5   : > { %1006 = vrot.lane.b32.xlu2 %v841_v33, %s1359_s26  ;;  %852 = vrot.lane.b32.xlu0 %v841_v33, %s1358_s25 }
  0xdd   : > { %850 = vrot.lane.b32.xlu0 %v1506_v36, %s1358_s25 }
 0x127   : > { %v849_v42 = vpop.permute.xlu1 %848 }
 0x128   : > { %v871_v43 = vsel %vm854_vm1, %v849_v42, 0  ;;  %v1360_v42 = vmov 0  }
 0x129   : > { %1312 = vset.pattern.permute.xlu2 %v1360_v42  ;;  %1310 = vset.pattern.permute.xlu0 %v1360_v42 }
 0x12a   : > { %1311 = vset.pattern.permute.xlu1 %v1360_v42 }
 0x12f   : > { %v1007_v37 = vpop.permute.xlu2 %1006  ;;  %v847_v44 = vpop.permute.xlu1 %846 }
 0x130   : > { %1028 = vmatpush.bf16.msra.mxu2 %v1007_v37  ;;  %v868_v45 = vsel %vm854_vm1, %v847_v44, 0 }
 0x147   : > { %v853_v38 = vpop.permute.xlu0 %852 }
 0x148   : > { %v877_v39 = vsel %vm854_vm1, %v853_v38, 0 }
 0x149   : > { %883 = vmatpush.bf16.xpose.msra.mxu1 %v877_v39 }
 0x14f   : > { %v851_v40 = vpop.permute.xlu0 %850 }
 0x150   : > { %v874_v41 = vsel %vm854_vm1, %v851_v40, 0 }
 0x151   : > { %884 = vmatpush.bf16.xpose.msra.mxu1 %v874_v41 }
 0x159   : > { %885 = vmatpush.bf16.xpose.msra.mxu1 %v871_v43 }
 0x161   : > { %886 = vmatpush.bf16.xpose.msra.mxu1 %v868_v45 }
 0x168   : > { %1258 = vmatmul.msk.bf16.vlgmr.msra.gmra.mxu1 %vm854_vm1, %v838_v27 }
 0x178   : > { %1259 = vmatmul.msk.bf16.gmra.mxu1 %vm854_vm1, %v1484_v23 }
 0x188   : > { %1260 = vmatmul.msk.bf16.gmra.mxu1 %vm854_vm1, %v1506_v36 }
 0x198   : > { %1261 = vmatmul.msk.bf16.gmra.mxu1 %vm854_vm1, %v841_v33 }
 0x1e5   : > { %v888_v46 = vpop.f32.mrf.mxu1 }
 0x1e6   : > { %v908_v47 = vsel %vm382_vm0, %v888_v46, -inf }
 0x1e7   : > { %909 = vmax.xlane.f32.xlu2 %v908_v47 }
 0x1ed   : > { %v890_v48 = vpop.f32.mrf.mxu1 }
 0x1ee   : > { %v911_v49 = vsel %vm382_vm0, %v890_v48, -inf }
 0x1ef   : > { %912 = vmax.xlane.f32.xlu2 %v911_v49 }
 0x1f5   : > { %v893_v50 = vpop.f32.mrf.mxu1 }
 0x1f6   : > { %v914_v51 = vsel %vm382_vm0, %v893_v50, -inf }
 0x1f7   : > { %915 = vmax.xlane.f32.xlu0 %v914_v51 }
 0x1fd   : > { %v895_v52 = vpop.f32.mrf.mxu1 }
 0x1fe   : > { %v917_v53 = vsel %vm382_vm0, %v895_v52, -inf }
 0x1ff   : > { %918 = vmax.xlane.f32.xlu1 %v917_v53 }
 0x205   : > { %v1515_v54 = vpop.f32.mrf.mxu1 }
 0x206   : > { %v920_v55 = vsel %vm382_vm0, %v1515_v54, -inf }
 0x207   : > { %921 = vmax.xlane.f32.xlu2 %v920_v55  ;;  %v478_v55 = vld [vmem:[%s1963_s7] sm:$0xff] }
 0x20d   : > { %v900_v56 = vpop.f32.mrf.mxu1 }
 0x20e   : > { %v923_v57 = vsel %vm382_vm0, %v900_v56, -inf }
 0x20f   : > { %924 = vmax.xlane.f32.xlu2 %v923_v57  ;;  %v490_v57 = vld [vmem:[%s1964_s8 + $0x20] sm:$0xff] }
 0x215   : > { %v903_v58 = vpop.f32.mrf.mxu1 }
 0x216   : > { %v926_v59 = vsel %vm382_vm0, %v903_v58, -inf }
 0x217   : > { %927 = vmax.xlane.f32.xlu2 %v926_v59  ;;  %v492_v59 = vld [vmem:[%s1964_s8 + $0x30] sm:$0xff] }
 0x21d   : > { %v905_v60 = vpop.f32.mrf.mxu1 }
 0x21e   : > { %v929_v61 = vsel %vm382_vm0, %v905_v60, -inf }
 0x21f   : > { %930 = vmax.xlane.f32.xlu2 %v929_v61 }
 0x237   : > { %1000 = vrot.lane.b32.xlu2 %v838_v27, %s1359_s26 }
 0x25a   : > { %v910_v62 = vpop.xlane.xlu2 %909 }
 0x25b   : > { %v932_v63 = vsub.f32 %v888_v46, %v910_v62  ;;  %v493_v62 = vld [vmem:[%s1964_s8 + $0x38] sm:$0xff] }
 0x25d   : > { %v940_v0 = vmul.f32 1.442695, %v932_v63  ;;  %v491_v63 = vld [vmem:[%s1964_s8 + $0x28] sm:$0xff] }
 0x25f   : > { %1317 = vpow2.f32 %v940_v0 }
 0x262   : > { %v913_v1 = vpop.xlane.xlu2 %912 }
 0x263   : > { %v933_v2 = vsub.f32 %v890_v48, %v913_v1 }
 0x265   : > { %v1523_v3 = vpop.eup %1317  ;;  %v942_v4 = vmul.f32 1.442695, %v933_v2 }
 0x266   : > { %v956_v6 = vsel %vm382_vm0, %v1523_v3, 0.0 }
 0x267   : > { %1319 = vpow2.f32 %v942_v4  ;;  %957 = vadd.xlane.f32.xlu0 %v956_v6  ;;  %v1361_v4 = vmov 0.0  }
 0x268   : > { %427 = vst.msk [vmem:[#allocation2 + $0x18] sm:$0xff] %vm382_vm0, %v1361_v4 }
 0x269   : > { %428 = vst.msk [vmem:[#allocation2 + $0x20] sm:$0xff] %vm382_vm0, %v1361_v4 }
 0x26a   : > { %v916_v9 = vpop.xlane.xlu0 %915  ;;  %424 = vst.msk [vmem:[#allocation2] sm:$0xff] %vm382_vm0, %v1361_v4 }
 0x26b   : > { %v934_v12 = vsub.f32 %v893_v50, %v916_v9  ;;  %425 = vst.msk [vmem:[#allocation2 + $0x8] sm:$0xff] %vm382_vm0, %v1361_v4 }
 0x26c   : > { %426 = vst.msk [vmem:[#allocation2 + $0x10] sm:$0xff] %vm382_vm0, %v1361_v4 }
 0x26d   : > { %v1527_v15 = vpop.eup %1319  ;;  %v944_v16 = vmul.f32 1.442695, %v934_v12  ;;  %429 = vst.msk [vmem:[#allocation2 + $0x28] sm:$0xff] %vm382_vm0, %v1361_v4 }
 0x26e   : > { %v959_v17 = vsel %vm382_vm0, %v1527_v15, 0.0  ;;  %430 = vst.msk [vmem:[#allocation2 + $0x30] sm:$0xff] %vm382_vm0, %v1361_v4 }
 0x26f   : > { %1321 = vpow2.f32 %v944_v16  ;;  %960 = vadd.xlane.f32.xlu1 %v959_v17  ;;  %431 = vst.msk [vmem:[#allocation2 + $0x38] sm:$0xff] %vm382_vm0, %v1361_v4 }
 0x270   : > { %432 = vst.msk [vmem:[#allocation2 + $0x40] sm:$0xff] %vm382_vm0, %v1361_v4 }
 0x271   : > { %433 = vst.msk [vmem:[#allocation2 + $0x48] sm:$0xff] %vm382_vm0, %v1361_v4 }
 0x272   : > { %v919_v37 = vpop.xlane.xlu1 %918  ;;  %435 = vst.msk [vmem:[#allocation2 + $0x50] sm:$0x3] %vm434_vm2, %v1361_v4 }
 0x273   : > { %v935_v39 = vsub.f32 %v895_v52, %v919_v37 }
 0x275   : > { %v1531_v18 = vpop.eup %1321 }
 0x276   : > { %v962_v19 = vsel %vm382_vm0, %v1531_v18, 0.0 }
 0x277   : > { %963 = vadd.xlane.f32.xlu2 %v962_v19 }
 0x27a   : > { %v922_v20 = vpop.xlane.xlu2 %921 }
 0x27b   : > { %1004 = vrot.lane.b32.xlu0 %v1506_v36, %s1359_s26  ;;  %v946_v36 = vmul.f32 1.442695, %v935_v39  ;;  %v936_v46 = vsub.f32 %v1515_v54, %v922_v20  ;;  %v486_v54 = vld [vmem:[%s1964_s8] sm:$0xff] }
 0x27d   : > { %v948_v48 = vmul.f32 1.442695, %v936_v46 }
 0x282   : > { %v925_v25 = vpop.xlane.xlu2 %924 }
 0x283   : > { %v937_v27 = vsub.f32 %v900_v56, %v925_v25  ;;  %v483_v56 = vld [vmem:[%s1963_s7 + $0x28] sm:$0xff] }
 0x285   : > { %v950_v28 = vmul.f32 1.442695, %v937_v27 }
 0x287   : > { %1323 = vpow2.f32 %v950_v28 }
 0x288   : > { %1002 = vrot.lane.b32.xlu1 %v1484_v23, %s1359_s26 }
 0x28a   : > { %v928_v29 = vpop.xlane.xlu2 %927 }
 0x28b   : > { %v938_v23 = vsub.f32 %v903_v58, %v928_v29  ;;  %v489_v58 = vld [vmem:[%s1964_s8 + $0x18] sm:$0xff] }
 0x28d   : > { %v1539_v30 = vpop.eup %1323  ;;  %v952_v45 = vmul.f32 1.442695, %v938_v23 }
 0x28e   : > { %v971_v33 = vsel %vm382_vm0, %v1539_v30, 0.0 }
 0x28f   : > { %972 = vadd.xlane.f32.xlu2 %v971_v33 }
 0x292   : > { %v931_v38 = vpop.xlane.xlu2 %930 }
 0x293   : > { %v939_v40 = vsub.f32 %v905_v60, %v931_v38  ;;  %v484_v60 = vld [vmem:[%s1963_s7 + $0x30] sm:$0xff] }
 0x295   : > { %v954_v41 = vmul.f32 1.442695, %v939_v40 }
 0x297   : > { %1325 = vpow2.f32 %v954_v41 }
 0x298   : > { %1327 = vpow2.f32 %v946_v36 }
 0x299   : > { %1329 = vpow2.f32 %v952_v45 }
 0x29a   : > { %1331 = vpow2.f32 %v948_v48  ;;  %v1001_v1 = vpop.permute.xlu2 %1000 }
 0x29d   : > { %v1543_v43 = vpop.eup %1325 }
 0x29e   : > { %v977_v44 = vsel %vm382_vm0, %v1543_v43, 0.0  ;;  %v1548_v47 = vpop.eup %1327 }
 0x29f   : > { %978 = vadd.xlane.f32.xlu2 %v977_v44  ;;  %v965_v49 = vsel %vm382_vm0, %v1548_v47, 0.0  ;;  %v1552_v50 = vpop.eup %1329 }
 0x2a0   : > { %v974_v51 = vsel %vm382_vm0, %v1552_v50, 0.0  ;;  %v1556_v52 = vpop.eup %1331 }
 0x2a1   : > { %v968_v53 = vsel %vm382_vm0, %v1556_v52, 0.0 }
 0x2a5   : > { %966 = vadd.xlane.f32.xlu0 %v965_v49  ;;  %v494_v49 = vld [vmem:[#allocation2] sm:$0xff] }
 0x2ad   : > { %975 = vadd.xlane.f32.xlu0 %v974_v51 }
 0x2b2   : > { %969 = vadd.xlane.f32.xlu1 %v968_v53 }
 0x2b7   : > { %448 = vrot.lane.b32.xlu2 %v1478_v21, %s1359_s26  ;;  %v481_v21 = vld [vmem:[%s1963_s7 + $0x18] sm:$0xff] }
 0x2bf   : > { %602 = vperm.xlu2 %1312, %v486_v54  }
 0x2c1   : > { %446 = vrot.lane.b32.xlu0 %v1487_v24, %s1359_s26  ;;  %v479_v24 = vld [vmem:[%s1963_s7 + $0x8] sm:$0xff] }
 0x2c7   : > { %450 = vrot.lane.b32.xlu2 %v1480_v22, %s1359_s26  ;;  %v488_v22 = vld [vmem:[%s1964_s8 + $0x10] sm:$0xff] }
 0x2c9   : > { %504 = vperm.xlu0 %1310, %v478_v55  }
 0x2cb   : > { %444 = vrot.lane.b32.xlu1 %v1489_v26, %s1359_s26  ;;  %v487_v26 = vld [vmem:[%s1964_s8 + $0x8] sm:$0xff] }
 0x2cf   : > { %519 = vperm.xlu2 %1312, %v481_v21   ;;  %v567_v21 = vld [vmem:[#allocation2 + $0x1] sm:$0xff] }
 0x2d1   : > { %452 = vrot.lane.b32.xlu0 %v1502_v35, %s1359_s26  ;;  %v480_v35 = vld [vmem:[%s1963_s7 + $0x10] sm:$0xff] }
 0x2d3   : > { %509 = vperm.xlu1 %1311, %v479_v24  }
 0x2d7   : > { %454 = vrot.lane.b32.xlu2 %v1500_v34, %s1359_s26 }
 0x2d9   : > { %612 = vperm.xlu0 %1310, %v488_v22  }
 0x2da   : > { %v958_v34 = vpop.xlane.xlu0 %957 }
 0x2db   : > { %607 = vperm.xlu1 %1311, %v487_v26  }
 0x2df   : > { %529 = vperm.xlu2 %1312, %v483_v56  }
 0x2e1   : > { %456 = vrot.lane.b32.xlu0 %v1493_v31, %s1359_s26 }
 0x2e2   : > { %v961_v61 = vpop.xlane.xlu1 %960 }
 0x2e3   : > { %514 = vperm.xlu1 %1311, %v480_v35   ;;  %1333 = vrcp.f32 %v961_v61 }
 0x2e4   : > { %1335 = vrcp.f32 %v958_v34 }
 0x2e7   : > { %458 = vrot.lane.b32.xlu2 %v1495_v32, %s1359_s26  ;;  %v482_v32 = vld [vmem:[%s1963_s7 + $0x20] sm:$0xff] }
 0x2e9   : > { %622 = vperm.xlu0 %1310, %v490_v57   ;;  %v1334_v0 = vpop.eup %1333 }
 0x2ea   : > { %v1336_v6 = vpop.eup %1335  ;;  %v989_v9 = vmul.f32 %v1334_v0, %v1527_v15  ;;  %v485_v15 = vld [vmem:[%s1963_s7 + $0x38] sm:$0xff]  ;;  %v964_v17 = vpop.xlane.xlu2 %963 }
 0x2eb   : > { %617 = vperm.xlu1 %1311, %v489_v58   ;;  %v988_v12 = vmul.f32 %v1336_v6, %v1523_v3  ;;  %1337 = vrcp.f32 %v964_v17 }
 0x2ed   : > { %v1005_v31 = vpop.permute.xlu0 %1004  ;;  %v996_v16 = vpack.c.bf16 %v989_v9, %v988_v12 }
 0x2ee   : > { %1029 = vmatpush.bf16.msra.mxu2 %v1005_v31 }
 0x2ef   : > { %632 = vperm.xlu2 %1312, %v492_v59  }
 0x2f1   : > { %534 = vperm.xlu0 %1310, %v484_v60   ;;  %v1338_v27 = vpop.eup %1337 }
 0x2f2   : > { %v990_v29 = vmul.f32 %v1338_v27, %v1531_v18 }
 0x2f3   : > { %524 = vperm.xlu1 %1311, %v482_v32  }
 0x2f9   : > { %637 = vperm.xlu0 %1310, %v493_v62  }
 0x2fa   : > { %v1003_v2 = vpop.permute.xlu1 %1002 }
 0x2fb   : > { %1030 = vmatpush.bf16.msra.mxu2 %v1003_v2  ;;  %627 = vperm.xlu1 %1311, %v491_v63  }
 0x2ff   : > { %1031 = vmatpush.bf16.msra.mxu2 %v1001_v1 }
 0x302   : > { %1262 = vmatmul.msk.bf16.vlgmr.msra.gmra.mxu2 %vm382_vm0, %v996_v16  ;;  %v973_v3 = vpop.xlane.xlu2 %972 }
 0x303   : > { %539 = vperm.xlu1 %1311, %v485_v15  }
 0x312   : > { %v979_v19 = vpop.xlane.xlu2 %978 }
 0x318   : > { %v967_v20 = vpop.xlane.xlu0 %966 }
 0x319   : > { %1339 = vrcp.f32 %v967_v20 }
 0x31a   : > { %v449_v25 = vpop.permute.xlu2 %448 }
 0x31b   : > { %470 = vst.msk [vmem:[#allocation2 + $0x19] sm:$0xff] %vm382_vm0, %v449_v25 }
 0x31f   : > { %v1340_v28 = vpop.eup %1339 }
 0x320   : > { %v991_v33 = vmul.f32 %v1340_v28, %v1548_v47  ;;  %v976_v41 = vpop.xlane.xlu0 %975 }
 0x322   : > { %v1650_v37 = vpop.permute.xlu2 %602  ;;  %v997_v38 = vpack.c.bf16 %v991_v33, %v990_v29 }
 0x324   : > { %1263 = vmatmul.msk.bf16.gmra.mxu2 %vm382_vm0, %v997_v38 }
 0x325   : > { %v970_v39 = vpop.xlane.xlu1 %969 }
 0x326   : > { %1341 = vrcp.f32 %v970_v39 }
 0x327   : > { %1343 = vrcp.f32 %v973_v3 }
 0x328   : > { %1345 = vrcp.f32 %v976_v41 }
 0x329   : > { %1347 = vrcp.f32 %v979_v19 }
 0x32a   : > { %v451_v40 = vpop.permute.xlu2 %450 }
 0x32b   : > { %471 = vst.msk [vmem:[#allocation2 + $0x21] sm:$0xff] %vm382_vm0, %v451_v40 }
 0x32c   : > { %v1342_v36 = vpop.eup %1341 }
 0x32d   : > { %v1344_v42 = vpop.eup %1343  ;;  %v992_v23 = vmul.f32 %v1342_v36, %v1556_v52  ;;  %v1720_v36 = vld [vmem:[%s1959_s3 + $0x8] ss:$0 sm:$0xff] }
 0x32e   : > { %v993_v18 = vmul.f32 %v1344_v42, %v1539_v30  ;;  %v1346_v48 = vpop.eup %1345  ;;  %v476_v30 = vld [vmem:[%s1959_s3] sm:$0xff] }
 0x32f   : > { %v1348_v53 = vpop.eup %1347  ;;  %v994_v55 = vmul.f32 %v1346_v48, %v1552_v50  ;;  %v1666_v24 = vperm.slane %v476_v30, 0  ;;  %v1668_v22 = vperm.slane %v476_v30, 1  ;;  %v1677_v50 = vperm.slane %v476_v30, 2 }
 0x330   : > { %v998_v45 = vpack.c.bf16 %v993_v18, %v992_v23  ;;  %v995_v26 = vmul.f32 %v1348_v53, %v1543_v43  ;;  %v1687_v63 = vperm.slane %v476_v30, 3  ;;  %v1692_v2 = vperm.slane %v476_v30, 4 }
 0x331   : > { %v576_v56 = vmul.f32 %v1668_v22, %v567_v21  ;;  %v1696_v9 = vperm.slane %v476_v30, 5  ;;  %v1706_v20 = vperm.slane %v476_v30, 6  ;;  %v1722_v42 = vperm.slane %v476_v30, 7 }
 0x332   : > { %v1656_v44 = vpop.permute.xlu2 %519  ;;  %v999_v57 = vpack.c.bf16 %v995_v26, %v994_v55 }
 0x333   : > { %v447_v46 = vpop.permute.xlu0 %446 }
 0x334   : > { %469 = vst.msk [vmem:[#allocation2 + $0x11] sm:$0xff] %vm382_vm0, %v447_v46  ;;  %1264 = vmatmul.msk.bf16.gmra.mxu2 %vm382_vm0, %v998_v45 }
 0x33a   : > { %v455_v47 = vpop.permute.xlu2 %454 }
 0x33b   : > { %473 = vst.msk [vmem:[#allocation2 + $0x31] sm:$0xff] %vm382_vm0, %v455_v47  ;;  %v505_v51 = vpop.permute.xlu0 %504  ;;  %v1709_v28 = vld [vmem:[#allocation2 + $0x12] sm:$0xff] }
 0x33c   : > { %v542_v54 = vmul.f32 %v505_v51, %v494_v49  ;;  %v1714_v39 = vld [vmem:[#allocation2 + $0x11] sm:$0xff]  ;;  %v801_v23 = vmul.f32 %v1650_v37, %v1709_v28 }
 0x33d   : > { %v445_v52 = vpop.permute.xlu1 %444  ;;  %v784_v45 = vmul.f32 %v1722_v42, %v1714_v39 }
 0x33e   : > { %468 = vst.msk [vmem:[#allocation2 + $0x9] sm:$0xff] %vm382_vm0, %v445_v52  ;;  %v551_v35 = vmul.f32 %v1666_v24, %v542_v54  ;;  %v810_v48 = vmul.f32 %v1720_v36, %v801_v23 }
 0x340   : > { %v584_v43 = vadd.f32 %v576_v56, %v551_v35 }
 0x342   : > { %v1673_v34 = vpop.permute.xlu2 %529  ;;  %v1743_v21 = vld [vmem:[#allocation2 + $0x31] sm:$0xff] }
 0x343   : > { %v453_v58 = vpop.permute.xlu0 %452 }
 0x344   : > { %472 = vst.msk [vmem:[#allocation2 + $0x29] sm:$0xff] %vm382_vm0, %v453_v58  ;;  %1265 = vmatmul.msk.bf16.gmra.mxu2 %vm382_vm0, %v999_v57  ;;  %v582_v58 = vmul.f32 %v1668_v22, %v1743_v21 }
 0x345   : > { %v1679_v59 = vld [vmem:[#allocation2 + $0x8] sm:$0xff]  ;;  %v1681_v60 = vpop.permute.xlu1 %509  ;;  %v1694_v6 = vld [vmem:[#allocation2 + $0x10] sm:$0xff] }
 0x346   : > { %v592_v31 = vld [vmem:[#allocation2 + $0x2] sm:$0xff]  ;;  %v673_v32 = vmul.f32 %v505_v51, %v1679_v59  ;;  %v1685_v62 = vld [vmem:[#allocation2 + $0xa] sm:$0xff]  ;;  %v757_v27 = vmul.f32 %v1694_v6, %v505_v51 }
 0x347   : > { %v640_v61 = vmul.f32 %v1650_v37, %v592_v31  ;;  %v1690_v1 = vld [vmem:[#allocation2 + $0x9] sm:$0xff]  ;;  %v731_v15 = vmul.f32 %v1685_v62, %v1650_v37 }
 0x348   : > { %v682_v16 = vmul.f32 %v1687_v63, %v673_v32  ;;  %v707_v19 = vmul.f32 %v1692_v2, %v1690_v1  ;;  %v766_v41 = vmul.f32 %v1706_v20, %v757_v27 }
 0x349   : > { %v649_v0 = vmul.f32 %v1677_v50, %v640_v61  ;;  %v740_v38 = vmul.f32 %v1696_v9, %v731_v15 }
 0x34a   : > { %v459_v17 = vpop.permute.xlu2 %458 }
 0x34b   : > { %v657_v12 = vadd.f32 %v649_v0, %v584_v43  ;;  %475 = vst.msk [vmem:[#allocation2 + $0x41] sm:$0xff] %vm382_vm0, %v459_v17  ;;  %v1702_v3 = vpop.permute.xlu0 %612  ;;  %v1741_v55 = vld [vmem:[#allocation2 + $0x30] sm:$0xff]  ;;  %v1297_v0 = vld [vmem:[%s1961_s5 + $0x18] sm:$0xff] }
 0x34c   : > { %1133 = vmatpush.bf16.msra.mxu3 %v1297_v0  ;;  %v1294_v0 = vld [vmem:[%s1961_s5] sm:$0xff] }
 0x34d   : > { %v690_v25 = vadd.f32 %v682_v16, %v657_v12  ;;  %v1711_v29 = vpop.permute.xlu1 %607 }
 0x34f   : > { %v715_v33 = vadd.f32 %v707_v19, %v690_v25 }
 0x351   : > { %v748_v40 = vadd.f32 %v740_v38, %v715_v33 }
 0x352   : > { %v633_v52 = vpop.permute.xlu2 %632 }
 0x353   : > { %v774_v18 = vadd.f32 %v766_v41, %v748_v40  ;;  %v457_v46 = vpop.permute.xlu0 %456  ;;  %v543_v40 = vmul.f32 %v1681_v60, %v1679_v59  ;;  %v730_v41 = vld [vmem:[#allocation2 + $0x42] sm:$0xff] }
 0x354   : > { %474 = vst.msk [vmem:[#allocation2 + $0x39] sm:$0xff] %vm382_vm0, %v457_v46  ;;  %v705_v46 = vld [vmem:[#allocation2 + $0x41] sm:$0xff] }
 0x355   : > { %v792_v47 = vadd.f32 %v784_v45, %v774_v18  ;;  %v1730_v49 = vpop.permute.xlu1 %514  ;;  %v1296_v45 = vld [vmem:[%s1961_s5 + $0x10] sm:$0xff]  ;;  %v1295_v59 = vld [vmem:[%s1961_s5 + $0x8] sm:$0xff] }
 0x356   : > { %1134 = vmatpush.bf16.msra.mxu3 %v1296_v45 }
 0x357   : > { %v1732_v51 = vadd.f32 %v810_v48, %v792_v47  ;;  %v641_v47 = vmul.f32 %v1685_v62, %v1711_v29 }
 0x359   : > { %v650_v62 = vmul.f32 %v1677_v50, %v641_v47 }
 0x35a   : > { %1135 = vmatpush.bf16.msra.mxu3 %v1295_v59 }
 0x35b   : > { %v1735_v53 = vpop.permute.xlu0 %622  ;;  %v1739_v30 = vld [vmem:[#allocation2 + $0x32] sm:$0xff]  ;;  %v1755_v43 = vld [vmem:[#allocation2 + $0x3a] sm:$0xff] }
 0x35c   : > { %v646_v56 = vmul.f32 %v1739_v30, %v633_v52  ;;  %v1747_v35 = vld [vmem:[#allocation2 + $0x38] sm:$0xff]  ;;  %v737_v17 = vmul.f32 %v633_v52, %v1755_v43  ;;  %v672_v19 = vld [vmem:[#allocation2 + $0x40] sm:$0xff] }
 0x35d   : > { %v1737_v37 = vpop.permute.xlu1 %617  ;;  %v1761_v12 = vld [vmem:[#allocation2 + $0x39] sm:$0xff] }
 0x35e   : > { %v655_v32 = vmul.f32 %v1677_v50, %v646_v56  ;;  %v713_v25 = vmul.f32 %v1692_v2, %v1761_v12  ;;  %v746_v18 = vmul.f32 %v1696_v9, %v737_v17  ;;  %v552_v56 = vmul.f32 %v1666_v24, %v543_v40  ;;  %1136 = vmatpush.bf16.msra.mxu3 %v1294_v0 }
 0x35f   : > { %v674_v17 = vmul.f32 %v1694_v6, %v1681_v60 }
 0x363   : > { %v535_v54 = vpop.permute.xlu0 %534 }
 0x364   : > { %v548_v26 = vmul.f32 %v535_v54, %v1741_v55  ;;  %v679_v31 = vmul.f32 %v1747_v35, %v535_v54  ;;  %v763_v33 = vmul.f32 %v672_v19, %v535_v54 }
 0x365   : > { %v1749_v57 = vpop.permute.xlu1 %524 }
 0x366   : > { %v557_v4 = vmul.f32 %v1666_v24, %v548_v26  ;;  %v688_v15 = vmul.f32 %v1687_v63, %v679_v31  ;;  %v772_v54 = vmul.f32 %v1706_v20, %v763_v33  ;;  %v807_v26 = vmul.f32 %v730_v41, %v633_v52 }
 0x368   : > { %v590_v61 = vadd.f32 %v582_v58, %v557_v4  ;;  %v790_v58 = vmul.f32 %v1722_v42, %v705_v46 }
 0x36a   : > { %v663_v16 = vadd.f32 %v655_v32, %v590_v61  ;;  %v577_v61 = vmul.f32 %v1668_v22, %v1690_v1  ;;  %v1797_v1 = vld [vmem:[%s1960_s4] ss:$0 sm:$0xff] }
 0x36b   : > { %v638_v31 = vpop.permute.xlu0 %637 }
 0x36c   : > { %v696_v27 = vadd.f32 %v688_v15, %v663_v16  ;;  %v816_v16 = vmul.f32 %v1720_v36, %v807_v26  ;;  %v585_v15 = vadd.f32 %v577_v61, %v552_v56  ;;  %v738_v56 = vmul.f32 %v730_v41, %v638_v31 }
 0x36d   : > { %v1767_v38 = vpop.permute.xlu1 %627  ;;  %v708_v61 = vmul.f32 %v1692_v2, %v1714_v39 }
 0x36e   : > { %v721_v23 = vadd.f32 %v713_v25, %v696_v27  ;;  %v647_v25 = vmul.f32 %v638_v31, %v1755_v43  ;;  %v658_v40 = vadd.f32 %v650_v62, %v585_v15  ;;  %v800_v62 = vld [vmem:[#allocation2 + $0x4a] sm:$0xff]  ;;  %v747_v41 = vmul.f32 %v1696_v9, %v738_v56 }
 0x370   : > { %v754_v48 = vadd.f32 %v746_v18, %v721_v23  ;;  %v583_v18 = vmul.f32 %v1761_v12, %v1668_v22 }
 0x372   : > { %v780_v4 = vadd.f32 %v772_v54, %v754_v48  ;;  %v683_v48 = vmul.f32 %v1687_v63, %v674_v17  ;;  %v656_v54 = vmul.f32 %v1677_v50, %v647_v25  ;;  %v782_v17 = vld [vmem:[#allocation2 + $0x49] sm:$0xff]  ;;  %v667_v25 = vld [vmem:[#allocation2 + $0x18] sm:$0xff] }
 0x374   : > { %v798_v32 = vadd.f32 %v790_v58, %v780_v4  ;;  %v691_v26 = vadd.f32 %v683_v48, %v658_v40 }
 0x375   : > { %v540_v52 = vpop.permute.xlu1 %539 }
 0x376   : > { %v549_v27 = vmul.f32 %v1747_v35, %v540_v52  ;;  %v824_v33 = vadd.f32 %v816_v16, %v798_v32  ;;  %v680_v45 = vmul.f32 %v672_v19, %v540_v52  ;;  %v756_v32 = vld [vmem:[#allocation2 + $0x48] sm:$0xff]  ;;  %v732_v19 = vmul.f32 %v1711_v29, %v1709_v28 }
 0x377   : > { %v714_v16 = vmul.f32 %v1692_v2, %v705_v46  ;;  %v764_v15 = vmul.f32 %v756_v32, %v540_v52 }
 0x378   : > { %v558_v23 = vmul.f32 %v1666_v24, %v549_v27  ;;  %v1803_v47 = vadd.f32 %v1797_v1, %v824_v33  ;;  %v689_v58 = vmul.f32 %v1687_v63, %v680_v45  ;;  %v716_v27 = vadd.f32 %v708_v61, %v691_v26  ;;  %v725_v61 = vld [vmem:[#allocation2 + $0x1a] sm:$0xff] }
 0x379   : > { %v808_v33 = vmul.f32 %v800_v62, %v638_v31  ;;  %v791_v45 = vmul.f32 %v1722_v42, %v782_v17  ;;  %v700_v31 = vld [vmem:[#allocation2 + $0x19] sm:$0xff]  ;;  %v802_v32 = vmul.f32 %v725_v61, %v1711_v29  ;;  %v544_v17 = vmul.f32 %v1694_v6, %v1730_v49 }
 0x37a   : > { %v591_v59 = vadd.f32 %v583_v18, %v558_v23  ;;  %v758_v23 = vmul.f32 %v667_v25, %v1681_v60  ;;  %v741_v18 = vmul.f32 %v1696_v9, %v732_v19  ;;  %v785_v62 = vmul.f32 %v1722_v42, %v700_v31 }
 0x37b   : > { %v817_v46 = vmul.f32 %v1720_v36, %v808_v33  ;;  %v553_v33 = vmul.f32 %v1666_v24, %v544_v17  ;;  %v578_v29 = vmul.f32 %v1714_v39, %v1668_v22  ;;  %v830_v6 = vadd.f32 %v1797_v1, %v1732_v51  ;;  %v669_v17 = vld [vmem:[#allocation2 + $0x28] sm:$0xff] }
 0x37c   : > { %v664_v4 = vadd.f32 %v656_v54, %v591_v59  ;;  %v773_v54 = vmul.f32 %v1706_v20, %v764_v15  ;;  %v749_v59 = vadd.f32 %v741_v18, %v716_v27  ;;  %v767_v26 = vmul.f32 %v1706_v20, %v758_v23  ;;  %v668_v18 = vld [vmem:[#allocation2 + $0x20] sm:$0xff] }
 0x37d   : > { %v811_v15 = vmul.f32 %v1720_v36, %v802_v32 }
 0x37e   : > { %v697_v0 = vadd.f32 %v689_v58, %v664_v4  ;;  %v775_v56 = vadd.f32 %v767_v26, %v749_v59  ;;  %v579_v59 = vmul.f32 %v700_v31, %v1668_v22 }
 0x380   : > { %v722_v40 = vadd.f32 %v714_v16, %v697_v0  ;;  %v793_v0 = vadd.f32 %v785_v62, %v775_v56 }
 0x382   : > { %v755_v48 = vadd.f32 %v747_v41, %v722_v40  ;;  %v819_v27 = vadd.f32 %v811_v15, %v793_v0  ;;  %v545_v41 = vmul.f32 %v667_v25, %v1656_v44  ;;  %v643_v40 = vmul.f32 %v725_v61, %v1737_v37  ;;  %v701_v15 = vld [vmem:[#allocation2 + $0x21] sm:$0xff] }
 0x384   : > { %v781_v52 = vadd.f32 %v773_v54, %v755_v48  ;;  %v554_v48 = vmul.f32 %v1666_v24, %v545_v41  ;;  %v831_v54 = vadd.f32 %v1797_v1, %v819_v27 }
 0x385   : > { %v1033_v4 = vpop.f32.mrf.mxu2 }
 0x386   : > { %v799_v58 = vadd.f32 %v791_v45, %v781_v52  ;;  %1053 = vst.msk [vmem:[#allocation3] sm:$0xff] %vm382_vm0, %v1033_v4  ;;  %v642_v45 = vmul.f32 %v1702_v3, %v1709_v28  ;;  %v586_v52 = vadd.f32 %v578_v29, %v553_v33  ;;  %v652_v4 = vmul.f32 %v1677_v50, %v643_v40  ;;  %v726_v40 = vld [vmem:[#allocation2 + $0x22] sm:$0xff] }
 0x387   : > { %v675_v28 = vmul.f32 %v667_v25, %v1730_v49  ;;  %v546_v33 = vmul.f32 %v668_v18, %v1749_v57  ;;  %v733_v29 = vmul.f32 %v725_v61, %v1702_v3  ;;  %v709_v25 = vmul.f32 %v1692_v2, %v700_v31 }
 0x388   : > { %v825_v60 = vadd.f32 %v817_v46, %v799_v58  ;;  %v676_v58 = vmul.f32 %v668_v18, %v1656_v44  ;;  %v651_v56 = vmul.f32 %v1677_v50, %v642_v45  ;;  %v734_v45 = vmul.f32 %v726_v40, %v1737_v37 }
 0x389   : > { %v580_v61 = vmul.f32 %v701_v15, %v1668_v22  ;;  %v760_v31 = vmul.f32 %v669_v17, %v1656_v44 }
 0x38a   : > { %v1824_v19 = vadd.f32 %v1797_v1, %v825_v60  ;;  %v587_v60 = vadd.f32 %v579_v59, %v554_v48  ;;  %v659_v32 = vadd.f32 %v651_v56, %v586_v52  ;;  %v685_v0 = vmul.f32 %v1687_v63, %v676_v58  ;;  %v702_v52 = vld [vmem:[#allocation2 + $0x29] sm:$0xff] }
 0x38b   : > { %v547_v48 = vmul.f32 %v669_v17, %v1673_v34  ;;  %v644_v58 = vmul.f32 %v726_v40, %v1735_v53  ;;  %v743_v56 = vmul.f32 %v1696_v9, %v734_v45  ;;  %v769_v44 = vmul.f32 %v1706_v20, %v760_v31 }
 0x38c   : > { %v660_v51 = vadd.f32 %v652_v4, %v587_v60  ;;  %v581_v60 = vmul.f32 %v702_v52, %v1668_v22  ;;  %v786_v45 = vmul.f32 %v1722_v42, %v701_v15  ;;  %v712_v31 = vmul.f32 %v1692_v2, %v1743_v21 }
 0x38d   : > { %v1035_v16 = vpop.f32.mrf.mxu2  ;;  %v1061_v23 = vld [vmem:[#allocation3] sm:$0xff] }
 0x38e   : > { %1054 = vst.msk [vmem:[#allocation3 + $0x8] sm:$0xff] %vm382_vm0, %v1035_v16  ;;  %v1069_v26 = vadd.f32 %v1061_v23, %v830_v6  ;;  %v684_v16 = vmul.f32 %v1687_v63, %v675_v28  ;;  %v693_v41 = vadd.f32 %v685_v0, %v660_v51  ;;  %v710_v23 = vmul.f32 %v1692_v2, %v701_v15  ;;  %v727_v6 = vld [vmem:[#allocation2 + $0x2a] sm:$0xff] }
 0x38f   : > { %v645_v4 = vmul.f32 %v727_v6, %v1767_v38  ;;  %v556_v28 = vmul.f32 %v1666_v24, %v547_v48  ;;  %v804_v48 = vmul.f32 %v727_v6, %v1737_v37  ;;  %v735_v37 = vmul.f32 %v727_v6, %v1735_v53 }
 0x390   : > { %v692_v27 = vadd.f32 %v684_v16, %v659_v32  ;;  %v718_v59 = vadd.f32 %v710_v23, %v693_v41  ;;  %v678_v16 = vmul.f32 %v1673_v34, %v1741_v55  ;;  %v677_v41 = vmul.f32 %v669_v17, %v1749_v57 }
 0x391   : > { %v654_v0 = vmul.f32 %v1677_v50, %v645_v4  ;;  %v803_v23 = vmul.f32 %v726_v40, %v1702_v3  ;;  %v813_v40 = vmul.f32 %v1720_v36, %v804_v48 }
 0x392   : > { %v751_v32 = vadd.f32 %v743_v56, %v718_v59  ;;  %v687_v59 = vmul.f32 %v1687_v63, %v678_v16 }
 0x393   : > { %v812_v15 = vmul.f32 %v1720_v36, %v803_v23 }
 0x395   : > { %v1062_v46 = vld [vmem:[#allocation3 + $0x8] sm:$0xff] }
 0x396   : > { %v1070_v39 = vadd.f32 %v1062_v46, %v831_v54  ;;  %v717_v54 = vadd.f32 %v709_v25, %v692_v27  ;;  %v555_v46 = vmul.f32 %v1666_v24, %v546_v33  ;;  %v589_v24 = vadd.f32 %v581_v60, %v556_v28 }
 0x397   : > { %v761_v60 = vmul.f32 %v1749_v57, %v1741_v55 }
 0x398   : > { %v1077_v62 = vpack.c.bf16 %v1070_v39, %v1069_v26  ;;  %v742_v26 = vmul.f32 %v1696_v9, %v733_v29  ;;  %v759_v39 = vmul.f32 %v668_v18, %v1730_v49  ;;  %v588_v51 = vadd.f32 %v580_v61, %v555_v46 }
 0x399   : > { %v653_v18 = vmul.f32 %v1677_v50, %v644_v58  ;;  %v777_v29 = vadd.f32 %v769_v44, %v751_v32  ;;  %v662_v25 = vadd.f32 %v654_v0, %v589_v24  ;;  %v787_v50 = vmul.f32 %v1722_v42, %v702_v52 }
 0x39a   : > { %1282 = vmatmul.msk.bf16.vlgmr.msra.gmra.mxu3 %vm382_vm0, %v1077_v62  ;;  %v750_v62 = vadd.f32 %v742_v26, %v717_v54  ;;  %v768_v49 = vmul.f32 %v1706_v20, %v759_v39  ;;  %v686_v54 = vmul.f32 %v1687_v63, %v677_v41  ;;  %v711_v61 = vmul.f32 %v1692_v2, %v702_v52 }
 0x39b   : > { %v661_v33 = vadd.f32 %v653_v18, %v588_v51  ;;  %v795_v4 = vadd.f32 %v787_v50, %v777_v29  ;;  %v695_v26 = vadd.f32 %v687_v59, %v662_v25  ;;  %v736_v63 = vmul.f32 %v1739_v30, %v1767_v38 }
 0x39c   : > { %v776_v22 = vadd.f32 %v768_v49, %v750_v62  ;;  %v744_v52 = vmul.f32 %v1696_v9, %v735_v37  ;;  %v762_v2 = vmul.f32 %v1747_v35, %v1673_v34  ;;  %v770_v18 = vmul.f32 %v1706_v20, %v761_v60 }
 0x39d   : > { %v694_v46 = vadd.f32 %v686_v54, %v661_v33  ;;  %v720_v58 = vadd.f32 %v712_v31, %v695_v26  ;;  %v821_v28 = vadd.f32 %v813_v40, %v795_v4  ;;  %v745_v6 = vmul.f32 %v1696_v9, %v736_v63  ;;  %v1316_v26 = vld [vmem:[%s1962_s6] ss:$0 sm:$0xff] }
 0x39e   : > { %v794_v17 = vadd.f32 %v786_v45, %v776_v22  ;;  %v771_v49 = vmul.f32 %v1706_v20, %v762_v2  ;;  %v805_v41 = vmul.f32 %v1739_v30, %v1735_v53  ;;  %v788_v24 = vmul.f32 %v1722_v42, %v1743_v21 }
 0x39f   : > { %v719_v39 = vadd.f32 %v711_v61, %v694_v46  ;;  %v753_v51 = vadd.f32 %v745_v6, %v720_v58  ;;  %v833_v16 = vadd.f32 %v1797_v1, %v821_v28  ;;  %v789_v22 = vmul.f32 %v1722_v42, %v1761_v12 }
 0x3a0   : > { %v820_v56 = vadd.f32 %v812_v15, %v794_v17  ;;  %v806_v33 = vmul.f32 %v1767_v38, %v1755_v43  ;;  %v814_v23 = vmul.f32 %v1720_v36, %v805_v41 }
 0x3a1   : > { %v752_v32 = vadd.f32 %v744_v52, %v719_v39  ;;  %v779_v57 = vadd.f32 %v771_v49, %v753_v51 }
 0x3a2   : > { %v832_v0 = vadd.f32 %v1797_v1, %v820_v56  ;;  %v815_v45 = vmul.f32 %v1720_v36, %v806_v33 }
 0x3a3   : > { %v778_v55 = vadd.f32 %v770_v18, %v752_v32  ;;  %v797_v29 = vadd.f32 %v789_v22, %v779_v57 }
 0x3a5   : > { %v796_v20 = vadd.f32 %v788_v24, %v778_v55  ;;  %v823_v53 = vadd.f32 %v815_v45, %v797_v29 }
 0x3a7   : > { %v1038_v27 = vpop.f32.mrf.mxu2  ;;  %v822_v30 = vadd.f32 %v814_v23, %v796_v20  ;;  %v835_v42 = vadd.f32 %v1797_v1, %v823_v53 }
 0x3a8   : > { %1055 = vst.msk [vmem:[#allocation3 + $0x10] sm:$0xff] %vm382_vm0, %v1038_v27 }
 0x3a9   : > { %v834_v48 = vadd.f32 %v1797_v1, %v822_v30 }
 0x3af   : > { %v1040_v3 = vpop.f32.mrf.mxu2  ;;  %v1063_v62 = vld [vmem:[#allocation3 + $0x10] sm:$0xff] }
 0x3b0   : > { %1056 = vst.msk [vmem:[#allocation3 + $0x18] sm:$0xff] %vm382_vm0, %v1040_v3  ;;  %v1071_v34 = vadd.f32 %v1063_v62, %v832_v0 }
 0x3b7   : > { %v1043_v44 = vpop.f32.mrf.mxu2  ;;  %v1064_v27 = vld [vmem:[#allocation3 + $0x18] sm:$0xff] }
 0x3b8   : > { %1057 = vst.msk [vmem:[#allocation3 + $0x20] sm:$0xff] %vm382_vm0, %v1043_v44  ;;  %v1072_v35 = vadd.f32 %v1064_v27, %v833_v16 }
 0x3ba   : > { %v1078_v9 = vpack.c.bf16 %v1072_v35, %v1071_v34 }
 0x3bc   : > { %1283 = vmatmul.msk.bf16.gmra.mxu3 %vm382_vm0, %v1078_v9 }
 0x3bf   : > { %v1045_v25 = vpop.f32.mrf.mxu2  ;;  %v1065_v21 = vld [vmem:[#allocation3 + $0x20] sm:$0xff] }
 0x3c0   : > { %1058 = vst.msk [vmem:[#allocation3 + $0x28] sm:$0xff] %vm382_vm0, %v1045_v25  ;;  %v1073_v38 = vadd.f32 %v1065_v21, %v834_v48 }
 0x3c7   : > { %v1048_v12 = vpop.f32.mrf.mxu2  ;;  %v1066_v43 = vld [vmem:[#allocation3 + $0x28] sm:$0xff] }
 0x3c8   : > { %1059 = vst.msk [vmem:[#allocation3 + $0x30] sm:$0xff] %vm382_vm0, %v1048_v12  ;;  %v1074_v54 = vadd.f32 %v1066_v43, %v835_v42 }
 0x3ca   : > { %v1079_v59 = vpack.c.bf16 %v1074_v54, %v1073_v38 }
 0x3cc   : > { %1284 = vmatmul.msk.bf16.gmra.mxu3 %vm382_vm0, %v1079_v59 }
 0x3cf   : > { %v1050_v36 = vpop.f32.mrf.mxu2  ;;  %v1067_v50 = vld [vmem:[#allocation3 + $0x30] sm:$0xff] }
 0x3d0   : > { %1060 = vst.msk [vmem:[#allocation3 + $0x38] sm:$0xff] %vm382_vm0, %v1050_v36  ;;  %v1075_v46 = vadd.f32 %v1067_v50, %v1803_v47  ;;  %v1349_v47 = vld [vmem:[%s1437_s20] sm:$0xff] }
 0x3d7   : > { %v1068_v17 = vld [vmem:[#allocation3 + $0x38] sm:$0xff] }
 0x3d8   : > { %v1076_v1 = vadd.f32 %v1068_v17, %v1824_v19 }
 0x3da   : > { %v1080_v4 = vpack.c.bf16 %v1076_v1, %v1075_v46 }
 0x3dc   : > { %1285 = vmatmul.msk.bf16.gmra.mxu3 %vm382_vm0, %v1080_v4 }
 0x41d   : > { %v1138_v61 = vpop.f32.mrf.mxu3 }
 0x41e   : > { %v1139_v31 = vadd.f32 %v1316_v26, %v1138_v61 }
 0x420   : > { %v1158_v19 = vadd.f32 %v1349_v47, %v1139_v31 }
 0x422   : > { %1166 = vst.msk [vmem:[%s1927_s27] sm:$0xff] %vm382_vm0, %v1158_v19 }
 0x425   : > { %v1140_v3 = vpop.f32.mrf.mxu3 }
 0x426   : > { %v1141_v15 = vadd.f32 %v1316_v26, %v1140_v3 }
 0x428   : > { %v1159_v37 = vadd.f32 %v1141_v15, %v1444_v5 }
 0x42a   : > { %1167 = vst.msk [vmem:[%s1927_s27 + $0x8] sm:$0xff] %vm382_vm0, %v1159_v37 }
 0x43f   : > { %v1143_v40 = vpop.f32.mrf.mxu3 }
 0x440   : > { %v1144_v63 = vadd.f32 %v1316_v26, %v1143_v40 }
 0x442   : > { %v1160_v39 = vadd.f32 %v1144_v63, %v1449_v7 }
 0x444   : > { %1168 = vst.msk [vmem:[%s1927_s27 + $0x10] sm:$0xff] %vm382_vm0, %v1160_v39 }
 0x447   : > { %v1145_v58 = vpop.f32.mrf.mxu3 }
 0x448   : > { %v1146_v56 = vadd.f32 %v1316_v26, %v1145_v58 }
 0x44a   : > { %v1161_v28 = vadd.f32 %v1146_v56, %v1452_v8 }
 0x44c   : > { %1169 = vst.msk [vmem:[%s1927_s27 + $0x18] sm:$0xff] %vm382_vm0, %v1161_v28 }
 0x44f   : > { %v1148_v52 = vpop.f32.mrf.mxu3 }
 0x450   : > { %v1149_v2 = vadd.f32 %v1316_v26, %v1148_v52 }
 0x452   : > { %v1162_v5 = vadd.f32 %v1149_v2, %v1458_v10 }
 0x454   : > { %1170 = vst.msk [vmem:[%s1927_s27 + $0x20] sm:$0xff] %vm382_vm0, %v1162_v5 }
 0x457   : > { %v1150_v60 = vpop.f32.mrf.mxu3 }
 0x458   : > { %v1151_v6 = vadd.f32 %v1316_v26, %v1150_v60 }
 0x45a   : > { %v1163_v7 = vadd.f32 %v1151_v6, %v1461_v11 }
 0x45c   : > { %1171 = vst.msk [vmem:[%s1927_s27 + $0x28] sm:$0xff] %vm382_vm0, %v1163_v7 }
 0x45f   : > { %v1153_v62 = vpop.f32.mrf.mxu3 }
 0x460   : > { %v1154_v32 = vadd.f32 %v1316_v26, %v1153_v62 }
 0x462   : > { %v1164_v51 = vadd.f32 %v1154_v32, %v1467_v13 }
 0x464   : > { %1172 = vst.msk [vmem:[%s1927_s27 + $0x30] sm:$0xff] %vm382_vm0, %v1164_v51 }
 0x467   : > { %v1155_v8 = vpop.f32.mrf.mxu3 }
 0x468   : > { %v1156_v0 = vadd.f32 %v1316_v26, %v1155_v8 }
 0x46a   : > { %v1165_v16 = vadd.f32 %v1156_v0, %v1470_v14 }
 0x46c   : > { %1173 = vst.msk [vmem:[%s1927_s27 + $0x38] sm:$0xff] %vm382_vm0, %v1165_v16 }
 0x46d PF: > { %s19_s30 = sadd.s32 1, %s1356_s30  }
 0x46e   : > { %p16_p4 = scmp.ge.s32.totalorder %s19_s30, 4  }
 0x470   :  { %18 = sbr.rel (!%p16_p4) target bundleno = 1 (0x1), region = 86 }

// kernel: c2psa_forward.7
= control target key start
LH: loop header
LB: loop body
LE: loop exit
PB: predicated region body
PF: predicated region fallthrough
CT: control target
= control target key end

     0   :  { %10 = vsyncpa [#allocation3], 0  ;;  %s938_s0 = inlined_call_operand.vmem [shape: bf16[128,64], index: 0, kind: input, shape index: {}]   ;;  %s939_s1 = inlined_call_operand.vmem [shape: f32[128,64], index: 1, kind: input, shape index: {}]   ;;  %s940_s2 = inlined_call_operand.vmem [shape: bf16[64,128], index: 2, kind: input, shape index: {}]   ;;  %s941_s3 = inlined_call_operand.vmem [shape: bf16[64,128], index: 3, kind: input, shape index: {}]   ;;  %s942_s4 = inlined_call_operand.vmem [shape: f32[1,128], index: 4, kind: input, shape index: {}]   ;;  %s943_s5 = inlined_call_operand.hbm [shape: f32[128,128], index: 5, kind: output, shape index: {}]  }
   0x1   :  { %12 = vsyncpa [#allocation3 + $0x1], 0  ;;  %s801_s18 = smov 0   ;;  %s803_s19 = smov 0  }
   0x2   :  { %s805_s20 = smov 0   ;;  %s807_s21 = smov 0  }
   0x3 LB: > { %s822_s22 = sadd.s32 4294967295, %s767_s21   ;;  %s566_s23 = sadd.s32 4294967294, %s767_s21   ;;  %s767_s21 = sphi %s807_s21, %s949_s21   ;;  %s763_s20 = sphi %s805_s20, %s948_s20   ;;  %s759_s19 = sphi %s803_s19, %s947_s19   ;;  %s755_s18 = sphi %s801_s18, %s946_s18  }
   0x4   : > { %s826_s24 = sadd.s32 1, %s767_s21   ;;  %s140_s25 = sadd.s32 1, %s763_s20 }
   0x5   : > { %s137_s26 = ssub.s32 %s767_s21, %s826_s24  ;;  %p150_p0 = scmp.ne.s32.totalorder %s763_s20, %s759_s19 }
   0x6   : > { %p138_p1 = scmp.eq.s32.totalorder %s137_s26, 0  ;;  %p151_p2 = scmp.eq.s32.totalorder %s822_s22, 3 }
   0x7   : > { %p156_p3 = scmp.ne.s32.totalorder %s759_s19, %s755_s18  ;;  %p157_p4 = scmp.eq.s32.totalorder %s566_s23, 3 }
   0x8   : > { %s837_s27 = scalar_select %p138_p1, %s763_s20, %s140_s25  }
   0x9   : > { %p839_p5 = por %p151_p2, %p150_p0  ;;  %p843_p6 = por %p157_p4, %p156_p3 }
   0xa   : > { %p569_p7 = scmp.ge.s32.totalorder %s767_s21, 1  ;;  %p202_p8 = scmp.lt.s32.totalorder %s767_s21, 5 }
   0xc   : > { %p203_p9 = pnand %p569_p7, %p202_p8 }
   0xd   : > { %s571_s9 = sshll.u32 (!%p203_p9), %s822_s22, 2  ;;  %s232_s16 = sand.u32 (!%p203_p9), 1, %s759_s19  }
   0xe   : > { %206 = sbr.rel (%p203_p9) target bundleno = 214 (0xd6), region = 40  ;;  %p236_p10 = scmp.lt.s32.totalorder (!%p203_p9), %s571_s9, 15 }
   0xf   : > { %s570_s17 = sshll.u32 (!%p203_p9), %s232_s16, 5  ;;  %s477_s8 = scalar_lea.sflag (!%p203_p9), [#allocation3], %s232_s16 }
  0x10   : > { %s895_s23 = scalar_lea.vmem (!%p203_p9), [#allocation2], %s570_s17 }
  0x13   : > { %v637_v0 = vld [vmem:[%s941_s3 + $0x18] sm:$0xff]  ;;  %v636_v2 = vld [vmem:[%s941_s3 + $0x10] sm:$0xff]  ;;  %s951_s9 = smov (!%p236_p10, %s571_s9), 15  ;;  %v635_v4 = vld [vmem:[%s941_s3 + $0x8] sm:$0xff]  ;;  %vm299_vm0 = vcmask 523264  }
  0x14   : > { %v633_v1 = vld [vmem:[%s940_s2 + $0x18] sm:$0xff]  ;;  %310 = vmatpush.bf16.msra.mxu0 %v637_v0  ;;  %639 = vmatpush.bf16.msra.mxu2 %v637_v0  ;;  %v632_v3 = vld [vmem:[%s940_s2 + $0x10] sm:$0xff]  ;;  %s574_s14 = sshll.u32 %s951_s9, 3  ;;  %v631_v5 = vld [vmem:[%s940_s2 + $0x8] sm:$0xff]  ;;  %s572_s6 = sshll.u32 %s951_s9, 2 }
  0x15   : > { %369 = vmatpush.bf16.msra.mxu1 %v633_v1  ;;  %643 = vmatpush.bf16.msra.mxu3 %v633_v1  ;;  %s245_s25 = scalar_lea.vmem %s939_s1, %s574_s14  ;;  %v634_v6 = vld [vmem:[%s941_s3] sm:$0xff]  ;;  %s239_s9 = scalar_lea.vmem %s938_s0, %s572_s6 }
  0x16   : > { %v261_v7 = vld [vmem:[%s245_s25] sm:$0xff]  ;;  %v262_v8 = vld [vmem:[%s245_s25 + $0x8] sm:$0xff]  ;;  %v263_v9 = vld [vmem:[%s245_s25 + $0x10] sm:$0xff] }
  0x17   : > { %v264_v10 = vld [vmem:[%s245_s25 + $0x18] sm:$0xff]  ;;  %v630_v11 = vld [vmem:[%s940_s2] sm:$0xff]  ;;  %v265_v12 = vpack.c.bf16 %v262_v8, %v261_v7  ;;  %v629_v15 = vld [vmem:[%s239_s9 + $0x8] sm:$0xff]  ;;  %s638_s25 = sshll.u32 %s822_s22, 5  ;;  %s489_s22 = sshll.u32 %s895_s23, 4  ;;  %s490_s22 = int_to_ptr.vmem [resolvable:$true] %s489_s22 }
  0x18   : > { %311 = vmatpush.bf16.msra.mxu0 %v636_v2  ;;  %640 = vmatpush.bf16.msra.mxu2 %v636_v2  ;;  %v266_v13 = vpack.c.bf16 %v264_v10, %v263_v9  ;;  %v628_v14 = vld [vmem:[%s239_s9] sm:$0xff]  ;;  %s488_s6 = scalar_lea.hbm %s943_s5, %s638_s25  ;;  %s725_s9 = scalar_lea.hbm %s943_s5, 128 }
  0x19   : > { %370 = vmatpush.bf16.msra.mxu1 %v632_v3  ;;  %644 = vmatpush.bf16.msra.mxu3 %v632_v3  ;;  %v688_v17 = vld [vmem:[%s942_s4] ss:$0 sm:$0xff]  ;;  %s491_s7 = sshll.u32 %s488_s6, 4  ;;  %s492_s7 = int_to_ptr.hbm [resolvable:$true] %s491_s7 }
  0x1a   : > { %s719_s10 = sshra.s32 %s492_s7, 4  ;;  %s720_s10 = int_to_ptr.hbm [resolvable:$true] %s719_s10 }
  0x1b   : > { %s721_s11 = scalar_lea.hbm %s720_s10, 32  ;;  %p726_p0 = scmp.lt.s32.totalorder %s720_s10, %s943_s5 }
  0x1c   : > { %312 = vmatpush.bf16.msra.mxu0 %v635_v4  ;;  %641 = vmatpush.bf16.msra.mxu2 %v635_v4  ;;  %p722_p11 = scmp.ne.s32.totalorder %s720_s10, %s721_s11  ;;  %p727_p1 = scmp.lt.s32.totalorder %s725_s9, %s721_s11 }
  0x1d   : > { %371 = vmatpush.bf16.msra.mxu1 %v631_v5  ;;  %645 = vmatpush.bf16.msra.mxu3 %v631_v5 }
  0x1e   : > { %p723_p12 = pnand %p722_p11, %p839_p5  ;;  %p728_p2 = por %p727_p1, %p726_p0 }
  0x20   : > { %313 = vmatpush.bf16.msra.mxu0 %v634_v6  ;;  %642 = vmatpush.bf16.msra.mxu2 %v634_v6  ;;  %p724_p13 = pneg %p723_p12 }
  0x21   : > { %372 = vmatpush.bf16.msra.mxu1 %v630_v11  ;;  %646 = vmatpush.bf16.msra.mxu3 %v630_v11 }
  0x22   : > { %p729_p3 = pnand %p728_p2, %p724_p13 }
  0x23   : > { %591 = vmatmul.msk.bf16.vlgmr.msra.gmra.mxu0 %vm299_vm0, %v265_v12  ;;  %592 = vmatmul.msk.bf16.vlgmr.msra.gmra.mxu2 %vm299_vm0, %v266_v13 }
  0x24   : > { %617 = vmatmul.msk.bf16.vlgmr.msra.gmra.mxu1 %vm299_vm0, %v628_v14  ;;  %618 = vmatmul.msk.bf16.vlgmr.msra.gmra.mxu3 %vm299_vm0, %v629_v15 }
  0xa0   : > { %v315_v16 = vpop.f32.mrf.mxu0 }
  0xa1   : > { %v374_v18 = vpop.f32.mrf.mxu1 }
  0xa2   : > { %v375_v19 = vadd.f32 %v374_v18, %v315_v16 }
  0xa4   : > { %v388_v20 = vadd.f32 %v688_v17, %v375_v19 }
  0xa6   : > { %v619_v21 = vmul.f32 -1.442695, %v388_v20  ;;  %v320_v22 = vpop.f32.mrf.mxu2 }
  0xa7   : > { %v379_v23 = vpop.f32.mrf.mxu3 }
  0xa8   : > { %689 = vpow2.f32 %v619_v21  ;;  %v380_v24 = vadd.f32 %v379_v23, %v320_v22  ;;  %v317_v25 = vpop.f32.mrf.mxu0 }
  0xa9   : > { %v376_v26 = vpop.f32.mrf.mxu1 }
  0xaa   : > { %v883_v27 = vadd.f32 %v688_v17, %v380_v24  ;;  %v377_v28 = vadd.f32 %v376_v26, %v317_v25 }
  0xac   : > { %v621_v29 = vmul.f32 -1.442695, %v883_v27  ;;  %v886_v30 = vadd.f32 %v688_v17, %v377_v28 }
  0xae   : > { %v690_v31 = vpop.eup %689  ;;  %691 = vpow2.f32 %v621_v29  ;;  %v620_v32 = vmul.f32 -1.442695, %v886_v30  ;;  %v322_v33 = vpop.f32.mrf.mxu2 }
  0xaf   : > { %v404_v34 = vadd.f32 1.0, %v690_v31  ;;  %v381_v35 = vpop.f32.mrf.mxu3 }
  0xb0   : > { %693 = vpow2.f32 %v620_v32  ;;  %v382_v36 = vadd.f32 %v381_v35, %v322_v33 }
  0xb1   : > { %695 = vrcp.f32 %v404_v34  ;;  %v419_v46 = vand.u32 2147483648, %v404_v34  ;;  %vm413_vm1 = vweird.f32 %v404_v34  ;;  %v417_v49 = vand.u32 2147483647, %v404_v34 }
  0xb2   : > { %v889_v37 = vadd.f32 %v688_v17, %v382_v36 }
  0xb3   : > { %v420_v54 = vor.u32 1.1754944e-38, %v419_v46  ;;  %vm418_vm4 = vcmp.eq.f32.partialorder %v417_v49, 8.507059e+37 }
  0xb4   : > { %v692_v38 = vpop.eup %691  ;;  %v622_v39 = vmul.f32 -1.442695, %v889_v37 }
  0xb5   : > { %v406_v40 = vadd.f32 1.0, %v692_v38 }
  0xb6   : > { %v694_v41 = vpop.eup %693  ;;  %697 = vpow2.f32 %v622_v39 }
  0xb7   : > { %v696_v42 = vpop.eup %695  ;;  %699 = vrcp.f32 %v406_v40  ;;  %v405_v44 = vadd.f32 1.0, %v694_v41  ;;  %v449_v59 = vand.u32 2147483648, %v406_v40  ;;  %v447_v63 = vand.u32 2147483647, %v406_v40 }
  0xb8   : > { %v409_v43 = vmul.f32 %v696_v42, %v404_v34  ;;  %vm414_vm2 = vweird.f32 %v696_v42  ;;  %vm443_vm6 = vweird.f32 %v406_v40 }
  0xb9   : > { %701 = vrcp.f32 %v405_v44  ;;  %vm415_vm3 = vmor %vm413_vm1, %vm414_vm2  ;;  %v434_v2 = vand.u32 2147483648, %v405_v44  ;;  %v450_v4 = vor.u32 1.1754944e-38, %v449_v59  ;;  %v432_v6 = vand.u32 2147483647, %v405_v44 }
  0xba   : > { %v410_v45 = vsub.f32 1.0, %v409_v43  ;;  %vm448_vm9 = vcmp.eq.f32.partialorder %v447_v63, 8.507059e+37  ;;  %vm428_vm10 = vweird.f32 %v405_v44 }
  0xbb   : > { %v435_v12 = vor.u32 1.1754944e-38, %v434_v2  ;;  %vm433_vm12 = vcmp.eq.f32.partialorder %v432_v6, 8.507059e+37 }
  0xbc   : > { %v698_v47 = vpop.eup %697  ;;  %v411_v48 = vmul.f32 %v696_v42, %v410_v45 }
  0xbd   : > { %v700_v50 = vpop.eup %699  ;;  %v407_v51 = vadd.f32 1.0, %v698_v47 }
  0xbe   : > { %v412_v52 = vadd.f32 %v696_v42, %v411_v48  ;;  %v439_v53 = vmul.f32 %v700_v50, %v406_v40  ;;  %vm444_vm5 = vweird.f32 %v700_v50 }
  0xbf   : > { %703 = vrcp.f32 %v407_v51  ;;  %v702_v55 = vpop.eup %701  ;;  %vm445_vm7 = vmor %vm443_vm6, %vm444_vm5  ;;  %v464_v15 = vand.u32 2147483648, %v407_v51  ;;  %v462_v18 = vand.u32 2147483647, %v407_v51  ;;  %vm458_vm14 = vweird.f32 %v407_v51 }
  0xc0   : > { %v416_v56 = vsel %vm415_vm3, %v696_v42, %v412_v52  ;;  %v440_v57 = vsub.f32 1.0, %v439_v53  ;;  %v424_v60 = vmul.f32 %v702_v55, %v405_v44  ;;  %vm429_vm8 = vweird.f32 %v702_v55 }
  0xc1   : > { %v421_v58 = vsel %vm418_vm4, %v420_v54, %v416_v56  ;;  %vm430_vm11 = vmor %vm428_vm10, %vm429_vm8  ;;  %v465_v21 = vor.u32 1.1754944e-38, %v464_v15  ;;  %vm463_vm0 = vcmp.eq.f32.partialorder %v462_v18, 8.507059e+37 }
  0xc2   : > { %v468_v61 = vmul.f32 %v421_v58, %v388_v20  ;;  %v441_v62 = vmul.f32 %v700_v50, %v440_v57  ;;  %v425_v0 = vsub.f32 1.0, %v424_v60 }
  0xc4   : > { %472 = vst [vmem:[%s895_s23] sm:$0xff] %v468_v61  ;;  %v442_v1 = vadd.f32 %v700_v50, %v441_v62  ;;  %v426_v5 = vmul.f32 %v702_v55, %v425_v0 }
  0xc5   : > { %v704_v3 = vpop.eup %703 }
  0xc6   : > { %v446_v7 = vsel %vm445_vm7, %v700_v50, %v442_v1  ;;  %v454_v8 = vmul.f32 %v704_v3, %v407_v51  ;;  %v427_v10 = vadd.f32 %v702_v55, %v426_v5  ;;  %vm459_vm13 = vweird.f32 %v704_v3 }
  0xc7   : > { %v451_v9 = vsel %vm448_vm9, %v450_v4, %v446_v7  ;;  %vm460_vm15 = vmor %vm458_vm14, %vm459_vm13 }
  0xc8   : > { %v470_v11 = vmul.f32 %v451_v9, %v883_v27  ;;  %v455_v13 = vsub.f32 1.0, %v454_v8  ;;  %v431_v14 = vsel %vm430_vm11, %v702_v55, %v427_v10 }
  0xc9   : > { %v436_v16 = vsel %vm433_vm12, %v435_v12, %v431_v14 }
  0xca   : > { %474 = vst [vmem:[%s895_s23 + $0x10] sm:$0xff] %v470_v11  ;;  %v456_v17 = vmul.f32 %v704_v3, %v455_v13  ;;  %v469_v19 = vmul.f32 %v436_v16, %v886_v30 }
  0xcc   : > { %v457_v20 = vadd.f32 %v704_v3, %v456_v17  ;;  %473 = vst [vmem:[%s895_s23 + $0x8] sm:$0xff] %v469_v19 }
  0xce   : > { %v461_v22 = vsel %vm460_vm15, %v704_v3, %v457_v20 }
  0xcf   : > { %v466_v23 = vsel %vm463_vm0, %v465_v21, %v461_v22 }
  0xd0   : > { %v471_v24 = vmul.f32 %v466_v23, %v889_v37 }
  0xd2   : > { %475 = vst [vmem:[%s895_s23 + $0x18] sm:$0xff] %v471_v24 }
  0xd3   : > { %732 = shalt.err (!%p729_p3)
}
  0xd4   : > { %s769_s16 = smov 128   ;;  %s770_s17 = smov 8  }
  0xd5   : > { %647 = dma.vmem_to_hbm [thread:$0]  (%p839_p5), %s490_s22, 512, %s492_s7, %s477_s8, %s769_s16, %s769_s16, %s770_s17  }
  0xd6 PF: > { %p653_p4 = scmp.ge.s32.totalorder %s767_s21, 2  ;;  %s506_s23 = sand.u32 1, %s755_s18  }
  0xd7   : > { %s507_s25 = scalar_lea.sflag [#allocation3], %s506_s23 }
  0xd8   : > { %p650_p7 = pnand %p653_p4, %p843_p6 }
  0xda   : > { %p651_p8 = pneg %p650_p7 }
  0xdc   : > { %750 = dma.done.wait (%p651_p8), %s507_s25, 512  }
  0xdd   : > { %752 = vsyncadd (%p651_p8), %s507_s25, 4294966784  ;;  %p15_p9 = scmp.ge.s32.totalorder %s826_s24, 6   ;;  %s946_s18 = smov %s759_s19 }
  0xde   : > { %s947_s19 = smov %s763_s20  ;;  %s948_s20 = smov %s837_s27 }
  0xdf   : > { %s949_s21 = smov %s826_s24  ;;  %17 = sbr.rel (!%p15_p9) target bundleno = 3 (0x3), region = 78 }
  0xe4   :  { %513 = vsyncpa [#allocation3], 1 }
  0xe5   :  { %515 = vsyncpa [#allocation3 + $0x1], 1 }

</bundles_post_ra>
